<compile_context>
chip_gen: v7x
topology: tpu7x:2x2x1
jax: 0.10.0
libtpu: 0.0.40
codegen_flags: <defaults>
</compile_context>

<pallas_src>
import math
import functools

import numpy as np
import jax
import jax.numpy as jnp
from jax.experimental import pallas as pl
from jax.experimental.pallas import tpu as pltpu


TM_MAX = 512   # GEMM row tile: 512 is at the measured HBM-roofline knee and, with
               # bf16 weights/intermediates, fits comfortably under 48 MiB on v7x.


@functools.lru_cache(maxsize=None)
def _vmem_limit_bytes():
    """Generation-aware scoped-VMEM limit (v5e/v6e: ~96 MiB, v7x: ~48 MiB)."""
    try:
        cap = int(pltpu.get_tpu_info().vmem_capacity_bytes)
    except Exception:
        cap = 64 * 1024 * 1024
    return int(max(32 * 1024 * 1024, min(cap * 3 // 4, 100 * 1024 * 1024)))


def _round_up(n, m):
    return ((n + m - 1) // m) * m


def _row_tiling(n, tm_max=TM_MAX):
    """Return (row_tile, padded_rows)."""
    if n <= tm_max:
        return n, n                         # single full block (always layout-legal)
    tm = tm_max - (tm_max % 8)
    while tm >= 128:
        if n % tm == 0:
            return tm, n
        tm -= 8
    tm = min(tm_max, 256)                   # ragged N: bounded zero padding
    return tm, _round_up(n, tm)


def _pick_heads_per_group(num_heads, d_k):
    """Heads per attention group so the group slab is 128-lane dense (or full d_model)."""
    if d_k >= 128 and d_k % 128 == 0:
        return 1
    if d_k < 128 and 128 % d_k == 0:
        g = 128 // d_k
        if g <= num_heads and num_heads % g == 0:
            return g
    return num_heads


def _qkv_group_perm(d_model, num_heads):
    """Column permutation so the fused QKV GEMM writes [Q_g | K_g | V_g] per head group."""
    d_k = d_model // num_heads
    hpg = _pick_heads_per_group(num_heads, d_k)
    gw = hpg * d_k
    idx = []
    for g in range(num_heads // hpg):
        for part in range(3):
            start = part * d_model + g * gw
            idx.extend(range(start, start + gw))
    return np.asarray(idx, dtype=np.int32)


# ---------------------------------------------------------------------------
# Kernel 1: row-tiled fused  [LayerNorm] -> GEMM -> +bias -> [ReLU] -> [+residual]
# Weight is pre-transposed (Din, Dout) and pre-cast to the MXU dtype.
# ---------------------------------------------------------------------------
def _make_fused_linear_kernel(*, apply_ln, ln_eps, din, activation, add_residual):
    def kernel(*refs):
        i = 0
        x_ref = refs[i]; i += 1
        if apply_ln:
            a_ref = refs[i]; b_ref = refs[i + 1]; i += 2
        w_ref = refs[i]; bias_ref = refs[i + 1]; i += 2
        if add_residual:
            res_ref = refs[i]; i += 1
        o_ref = refs[i]

        xv = x_ref[...]
        if apply_ln:
            # Module LayerNorm: unbiased std (ddof=1), eps added to std.
            x32 = xv.astype(jnp.float32)
            mean = jnp.mean(x32, axis=-1, keepdims=True)
            diff = x32 - mean
            var = jnp.sum(diff * diff, axis=-1, keepdims=True) * (1.0 / (din - 1))
            inv = pl.reciprocal(jnp.sqrt(var) + ln_eps, approx=True)      # EUP
            xv = a_ref[...] * diff * inv + b_ref[...]

        y = jnp.dot(xv.astype(w_ref.dtype), w_ref[...],
                    preferred_element_type=jnp.float32)                   # (TM, Dout)
        y = y + bias_ref[...]
        if activation == "relu":
            y = jnp.maximum(y, 0.0)
        if add_residual:
            y = y + res_ref[...].astype(jnp.float32)
        o_ref[...] = y.astype(o_ref.dtype)

    return kernel


def fused_linear(x2d, w_t, bias, *, ln_scale=None, ln_bias=None, ln_eps=1e-6,
                 activation=None, residual=None, out_dtype=jnp.float32,
                 tm_max=TM_MAX):
    """y = [LN](x) @ w_t + bias, optional ReLU, optional +residual.  w_t is (Din, Dout)."""
    n, din = x2d.shape
    din_w, dout = w_t.shape
    assert din == din_w
    tm, n_pad = _row_tiling(n, tm_max)
    if n_pad != n:
        x2d = jnp.pad(x2d, ((0, n_pad - n), (0, 0)))
        if residual is not None:
            residual = jnp.pad(residual, ((0, n_pad - n), (0, 0)))

    apply_ln = ln_scale is not None
    add_res = residual is not None

    in_specs = [pl.BlockSpec((tm, din), lambda i: (i, 0))]
    args = [x2d]
    if apply_ln:
        in_specs += [pl.BlockSpec((1, din), lambda i: (0, 0)),
                     pl.BlockSpec((1, din), lambda i: (0, 0))]
        args += [ln_scale.reshape(1, din), ln_bias.reshape(1, din)]
    in_specs += [pl.BlockSpec((din, dout), lambda i: (0, 0)),
                 pl.BlockSpec((1, dout), lambda i: (0, 0))]
    args += [w_t, bias.reshape(1, dout)]
    if add_res:
        in_specs += [pl.BlockSpec((tm, dout), lambda i: (i, 0))]
        args += [residual]

    kernel = _make_fused_linear_kernel(apply_ln=apply_ln, ln_eps=ln_eps, din=din,
                                       activation=activation, add_residual=add_res)

    out = pl.pallas_call(
        kernel,
        out_shape=jax.ShapeDtypeStruct((n_pad, dout), out_dtype),
        grid=(n_pad // tm,),
        in_specs=in_specs,
        out_specs=pl.BlockSpec((tm, dout), lambda i: (i, 0)),
        compiler_params=pltpu.CompilerParams(
            dimension_semantics=("parallel",),
            vmem_limit_bytes=_vmem_limit_bytes()),
    )(*args)

    if n_pad != n:
        out = out[:n]
    return out


# ---------------------------------------------------------------------------
# Kernel 2: multi-head attention + fused output projection + residual.
# Grid = (B, n_head_groups).  Input per step is the group's [Q_g|K_g|V_g] slab
# (128-lane dense columns).  x2 = x + bo + sum_g ctx_g @ Wo_g is accumulated in
# the output block across the group axis; scores are written per group (bf16).
# ---------------------------------------------------------------------------
def _attn_proj_kernel(qkv_ref, wo_ref, bo_ref, res_ref, *out_refs,
                      heads_per_group, d_k, scale, return_scores):
    x2_ref = out_refs[0]
    s_ref = out_refs[1] if return_scores else None
    g = pl.program_id(1)
    gw = heads_per_group * d_k

    @pl.when(g == 0)
    def _():
        # residual + output-projection bias, added exactly once per batch row
        x2_ref[0] = res_ref[0] + bo_ref[...]

    qkv = qkv_ref[0]                               # (S, 3*gw), MXU dtype (bf16)
    q_all = qkv[:, 0:gw] * scale                   # fold 1/sqrt(d_k) once per group
    k_all = qkv[:, gw:2 * gw]
    v_all = qkv[:, 2 * gw:3 * gw]

    parts = []
    for hl in range(heads_per_group):
        lo = hl * d_k
        q = q_all[:, lo:lo + d_k]
        k = k_all[:, lo:lo + d_k]
        v = v_all[:, lo:lo + d_k]

        scores = jax.lax.dot_general(
            q, k, dimension_numbers=(((1,), (1,)), ((), ())),
            preferred_element_type=jnp.float32)    # (S, S) f32
        if return_scores:
            s_ref[0, hl] = scores.astype(s_ref.dtype)

        # softmax in f32 (safe on v5e); denominator reciprocal on the EUP
        m = jnp.max(scores, axis=-1, keepdims=True)
        e = jnp.exp(scores - m)
        p = e * pl.reciprocal(jnp.sum(e, axis=-1, keepdims=True), approx=True)
        parts.append(jnp.dot(p.astype(v.dtype), v,
                             preferred_element_type=jnp.float32))   # (S, d_k) f32

    ctx = parts[0] if len(parts) == 1 else jnp.concatenate(parts, axis=-1)  # (S, gw)
    # fused output projection for this head group, accumulated into x2
    x2_ref[0] += jnp.dot(ctx.astype(wo_ref.dtype), wo_ref[...],
                         preferred_element_type=jnp.float32)


def attention_with_out_proj(qkv, wo_t, bo, x_res, *, num_heads,
                            return_scores=True, scores_dtype=jnp.bfloat16):
    """qkv: (B, S, 3*D) group-ordered slab.  Returns (x + ctx @ Wo^T + bo, scores)."""
    B, S, three_d = qkv.shape
    d_model = three_d // 3
    d_k = d_model // num_heads
    hpg = _pick_heads_per_group(num_heads, d_k)
    n_groups = num_heads // hpg
    gw = hpg * d_k
    scale = 1.0 / math.sqrt(d_k)

    kernel = functools.partial(_attn_proj_kernel, heads_per_group=hpg, d_k=d_k,
                               scale=scale, return_scores=return_scores)

    x2_shape = jax.ShapeDtypeStruct((B, S, d_model), jnp.float32)
    x2_spec = pl.BlockSpec((1, S, d_model), lambda b, g: (b, 0, 0))
    in_specs = [
        pl.BlockSpec((1, S, 3 * gw), lambda b, g: (b, 0, g)),     # [Q_g|K_g|V_g]
        pl.BlockSpec((gw, d_model), lambda b, g: (g, 0)),         # Wo rows of group g
        pl.BlockSpec((1, d_model), lambda b, g: (0, 0)),          # bo
        pl.BlockSpec((1, S, d_model), lambda b, g: (b, 0, 0)),    # residual x
    ]
    if return_scores:
        out_shape = (x2_shape,
                     jax.ShapeDtypeStruct((B, num_heads, S, S), scores_dtype))
        out_specs = (x2_spec,
                     pl.BlockSpec((1, hpg, S, S), lambda b, g: (b, g, 0, 0)))
    else:
        out_shape = x2_shape
        out_specs = x2_spec

    result = pl.pallas_call(
        kernel,
        out_shape=out_shape,
        grid=(B, n_groups),
        in_specs=in_specs,
        out_specs=out_specs,
        compiler_params=pltpu.CompilerParams(
            dimension_semantics=("parallel", "arbitrary"),
            vmem_limit_bytes=_vmem_limit_bytes()),
    )(qkv, wo_t, bo.reshape(1, d_model), x_res)

    if return_scores:
        return result
    return result, None


# ---------------------------------------------------------------------------
# One-time parameter preparation (hoisted OUT of the per-step forward).
# ---------------------------------------------------------------------------
def prepare_encoder_params(params, *, num_heads, matmul_dtype=jnp.bfloat16):
    d_model = params["wq"].shape[1]
    perm = _qkv_group_perm(d_model, num_heads)
    wqkv_t = jnp.concatenate([params["wq"], params["wk"], params["wv"]], axis=0).T
    bqkv = jnp.concatenate([params["bq"], params["bk"], params["bv"]])
    return {
        "wqkv_t": wqkv_t[:, perm].astype(matmul_dtype),   # (D, 3D), group-ordered cols
        "bqkv": bqkv[perm].astype(jnp.float32),
        "wo_t": params["wo"].T.astype(matmul_dtype),      # (D, D)
        "bo": params["bo"].astype(jnp.float32),
        "w1_t": params["w1"].T.astype(matmul_dtype),      # (D, Dff)
        "b1": params["b1"].astype(jnp.float32),
        "w2_t": params["w2"].T.astype(matmul_dtype),      # (Dff, D)
        "b2": params["b2"].astype(jnp.float32),
        "ln1_a": params["ln1_a"].astype(jnp.float32),
        "ln1_b": params["ln1_b"].astype(jnp.float32),
        "ln2_a": params["ln2_a"].astype(jnp.float32),
        "ln2_b": params["ln2_b"].astype(jnp.float32),
    }


# ---------------------------------------------------------------------------
# EncoderLayer forward (glue is reshape-only; all FLOPs in Pallas kernels)
# ---------------------------------------------------------------------------
def encoder_layer_forward(prep, x, mask=None, mask1=None, mask2=None, *,
                          num_heads, return_scores=True, scores_dtype=jnp.bfloat16):
    if mask is not None or mask1 is not None or mask2 is not None:
        # TODO(synk): masked attention branches not implemented (default path only).
        raise NotImplementedError("mask / mask1 / mask2 paths not implemented")

    B, S, D = x.shape
    N = B * S
    act_dtype = prep["wqkv_t"].dtype       # bf16 intermediate slabs (qkv / hmid)
    x2d = x.reshape(N, D)

    # --- sublayer 0: x2 = x + Wo @ attn(LN1(x))  (dropout = identity, eval) --------
    qkv = fused_linear(x2d, prep["wqkv_t"], prep["bqkv"],
                       ln_scale=prep["ln1_a"], ln_bias=prep["ln1_b"],
                       out_dtype=act_dtype)                              # (N, 3D)
    x2, scores = attention_with_out_proj(qkv.reshape(B, S, 3 * D),
                                         prep["wo_t"], prep["bo"], x,
                                         num_heads=num_heads,
                                         return_scores=return_scores,
                                         scores_dtype=scores_dtype)      # (B,S,D) f32
    x2_2d = x2.reshape(N, D)

    # --- sublayer 1: ret = x2 + FFN(LN2(x2)) ----------------------------------------
    hmid = fused_linear(x2_2d, prep["w1_t"], prep["b1"],
                        ln_scale=prep["ln2_a"], ln_bias=prep["ln2_b"],
                        activation="relu", out_dtype=act_dtype)          # (N, Dff)
    ret = fused_linear(hmid, prep["w2_t"], prep["b2"],
                       residual=x2_2d, out_dtype=jnp.float32)            # (N, D)

    return ret.reshape(B, S, D), scores


# ---------------------------------------------------------------------------
# Pure-JAX reference (mirrors the PyTorch module semantics, eval mode)
# ---------------------------------------------------------------------------
def reference_encoder_layer(params, x, *, num_heads):
    B, S, D = x.shape
    d_k = D // num_heads

    def layernorm(t, a, b, eps=1e-6):
        mean = t.mean(-1, keepdims=True)
        std = jnp.std(t, axis=-1, keepdims=True, ddof=1)
        return a * (t - mean) / (std + eps) + b

    def lin(t, w, b):
        return t @ w.T + b

    def split(t):
        return t.reshape(B, S, num_heads, d_k).transpose(0, 2, 1, 3)

    xn = layernorm(x, params["ln1_a"], params["ln1_b"])
    q = split(lin(xn, params["wq"], params["bq"]))
    k = split(lin(xn, params["wk"], params["bk"]))
    v = split(lin(xn, params["wv"], params["bv"]))
    scores = jnp.einsum("bhqd,bhkd->bhqk", q, k) / math.sqrt(d_k)
    p = jax.nn.softmax(scores, axis=-1)
    ctx = jnp.einsum("bhqk,bhkd->bhqd", p, v).transpose(0, 2, 1, 3).reshape(B, S, D)
    x2 = x + lin(ctx, params["wo"], params["bo"])

    x2n = layernorm(x2, params["ln2_a"], params["ln2_b"])
    ff = lin(jax.nn.relu(lin(x2n, params["w1"], params["b1"])),
             params["w2"], params["b2"])
    return x2 + ff, scores


if __name__ == "__main__":
    # Small shapes consistent with the module (d_model divisible by num_heads).
    B, S, D, H, DFF = 2, 8, 32, 4, 64

    key0 = jax.random.PRNGKey(0)
    keys = jax.random.split(key0, 16)

    def w(k, shape):
        return jax.random.normal(k, shape, dtype=jnp.float32) * 0.02

    params = {
        "ln1_a": jnp.ones((D,), jnp.float32), "ln1_b": jnp.zeros((D,), jnp.float32),
        "wq": w(keys[0], (D, D)), "bq": w(keys[1], (D,)),
        "wk": w(keys[2], (D, D)), "bk": w(keys[3], (D,)),
        "wv": w(keys[4], (D, D)), "bv": w(keys[5], (D,)),
        "wo": w(keys[6], (D, D)), "bo": w(keys[7], (D,)),
        "ln2_a": jnp.ones((D,), jnp.float32), "ln2_b": jnp.zeros((D,), jnp.float32),
        "w1": w(keys[8], (DFF, D)), "b1": w(keys[9], (DFF,)),
        "w2": w(keys[10], (D, DFF)), "b2": w(keys[11], (D,)),
    }

    x = jax.random.normal(keys[12], (B, S, D), dtype=jnp.float32)

    # One-time weight prep (bf16 MXU operands) -- NOT re-run per forward call.
    prep = prepare_encoder_params(params, num_heads=H)

    fwd = jax.jit(functools.partial(encoder_layer_forward, num_heads=H))
    out, att = fwd(prep, x)
    out = jax.block_until_ready(out)
    att = jax.block_until_ready(att)

    ref_out, ref_att = reference_encoder_layer(params, x, num_heads=H)

    assert out.shape == (B, S, D) and att.shape == (B, H, S, S)
    att32 = att.astype(jnp.float32)
    # Tolerances account for bf16 MXU operands / bf16 scores + approx reciprocals.
    assert jnp.allclose(att32, ref_att, atol=1.5e-2, rtol=2e-2), \
        float(jnp.max(jnp.abs(att32 - ref_att)))
    assert jnp.allclose(out, ref_out, atol=2.5e-2, rtol=2.5e-2), \
        float(jnp.max(jnp.abs(out - ref_out)))

    print("KERNEL_OK")
</pallas_src>

<mosaic_0001>
module attributes {stable_mosaic.version = 11 : i64} {
  func.func @kernel(%arg0: i32, %arg1: memref<16x32xf32, #tpu.memory_space<vmem>>, %arg2: memref<1x32xf32, #tpu.memory_space<vmem>>, %arg3: memref<1x32xf32, #tpu.memory_space<vmem>>, %arg4: memref<32x64xbf16, #tpu.memory_space<vmem>>, %arg5: memref<1x64xf32, #tpu.memory_space<vmem>>, %arg6: memref<16x64xbf16, #tpu.memory_space<vmem>>) attributes {dimension_semantics = [#tpu.dimension_semantics<parallel>], iteration_bounds = array<i64: 1>, scalar_prefetch = 0 : i64, scratch_operands = 0 : i64, tpu.core_type = #tpu.core_type<tc>, window_params = [{transform_indices = @transform_0, window_bounds = array<i64: 16, 32>}, {pipeline_mode = #tpu.pipeline_mode<synchronous>, transform_indices = @transform_1, window_bounds = array<i64: 1, 32>}, {pipeline_mode = #tpu.pipeline_mode<synchronous>, transform_indices = @transform_2, window_bounds = array<i64: 1, 32>}, {pipeline_mode = #tpu.pipeline_mode<synchronous>, transform_indices = @transform_3, window_bounds = array<i64: 32, 64>}, {pipeline_mode = #tpu.pipeline_mode<synchronous>, transform_indices = @transform_4, window_bounds = array<i64: 1, 64>}, {transform_indices = @transform_5, window_bounds = array<i64: 16, 64>}]} {
    %c0 = arith.constant 0 : index
    %c0_0 = arith.constant 0 : index
    %0 = vector.load %arg1[%c0, %c0_0] : memref<16x32xf32, #tpu.memory_space<vmem>>, vector<16x32xf32>
    %cst = arith.constant dense<0.000000e+00> : vector<16xf32>
    %1 = vector.multi_reduction <add>, %0, %cst [1] : vector<16x32xf32> to vector<16xf32>
    %2 = vector.shape_cast %1 : vector<16xf32> to vector<16x1xf32>
    %cst_1 = arith.constant 3.200000e+01 : f32
    %3 = vector.broadcast %cst_1 : f32 to vector<16x1xf32>
    %4 = arith.divf %2, %3 : vector<16x1xf32>
    %5 = vector.broadcast %4 : vector<16x1xf32> to vector<16x32xf32>
    %6 = arith.subf %0, %5 : vector<16x32xf32>
    %7 = arith.mulf %6, %6 : vector<16x32xf32>
    %cst_2 = arith.constant dense<0.000000e+00> : vector<16xf32>
    %8 = vector.multi_reduction <add>, %7, %cst_2 [1] : vector<16x32xf32> to vector<16xf32>
    %9 = vector.shape_cast %8 : vector<16xf32> to vector<16x1xf32>
    %cst_3 = arith.constant 0.0322580636 : f32
    %10 = vector.broadcast %cst_3 : f32 to vector<16x1xf32>
    %11 = arith.mulf %9, %10 : vector<16x1xf32>
    %12 = math.sqrt %11 : vector<16x1xf32>
    %cst_4 = arith.constant 9.99999997E-7 : f32
    %13 = vector.broadcast %cst_4 : f32 to vector<16x1xf32>
    %14 = arith.addf %12, %13 : vector<16x1xf32>
    %15 = tpu.reciprocal %14 {approx = true} : vector<16x1xf32> -> vector<16x1xf32>
    %c0_5 = arith.constant 0 : index
    %c0_6 = arith.constant 0 : index
    %16 = vector.load %arg2[%c0_5, %c0_6] : memref<1x32xf32, #tpu.memory_space<vmem>>, vector<1x32xf32>
    %17 = vector.broadcast %16 : vector<1x32xf32> to vector<16x32xf32>
    %18 = arith.mulf %17, %6 : vector<16x32xf32>
    %19 = vector.broadcast %15 : vector<16x1xf32> to vector<16x32xf32>
    %20 = arith.mulf %18, %19 : vector<16x32xf32>
    %c0_7 = arith.constant 0 : index
    %c0_8 = arith.constant 0 : index
    %21 = vector.load %arg3[%c0_7, %c0_8] : memref<1x32xf32, #tpu.memory_space<vmem>>, vector<1x32xf32>
    %22 = vector.broadcast %21 : vector<1x32xf32> to vector<16x32xf32>
    %23 = arith.addf %20, %22 : vector<16x32xf32>
    %24 = arith.truncf %23 : vector<16x32xf32> to vector<16x32xbf16>
    %c0_9 = arith.constant 0 : index
    %c0_10 = arith.constant 0 : index
    %25 = vector.load %arg4[%c0_9, %c0_10] : memref<32x64xbf16, #tpu.memory_space<vmem>>, vector<32x64xbf16>
    %cst_11 = arith.constant dense<0.000000e+00> : vector<16x64xf32>
    %26 = tpu.matmul %24, %25, %cst_11 {dimension_numbers = #tpu.dot_dimension_numbers<[1], [0], [0], [1], [0, 0, 1, 1], [], []>} : vector<16x32xbf16>, vector<32x64xbf16>, vector<16x64xf32> -> vector<16x64xf32>
    %c0_12 = arith.constant 0 : index
    %c0_13 = arith.constant 0 : index
    %27 = vector.load %arg5[%c0_12, %c0_13] : memref<1x64xf32, #tpu.memory_space<vmem>>, vector<1x64xf32>
    %28 = vector.broadcast %27 : vector<1x64xf32> to vector<16x64xf32>
    %29 = arith.addf %26, %28 : vector<16x64xf32>
    %cst_14 = arith.constant 0.000000e+00 : f32
    %30 = vector.broadcast %cst_14 : f32 to vector<16x64xf32>
    %31 = arith.maximumf %29, %30 : vector<16x64xf32>
    %32 = arith.truncf %31 : vector<16x64xf32> to vector<16x64xbf16>
    %c0_15 = arith.constant 0 : index
    %c0_16 = arith.constant 0 : index
    %33 = vector.load %arg6[%c0_15, %c0_16] : memref<16x64xbf16, #tpu.memory_space<vmem>>, vector<16x64xbf16>
    tpu.vector_store %arg6[%c0_15, %c0_16], %32 {strides = array<i32>} : memref<16x64xbf16, #tpu.memory_space<vmem>>, vector<16x64xbf16>,
    return
  }
  func.func @transform_0(%arg0: i32) -> (i32, i32) {
    %c0_i32 = arith.constant 0 : i32
    %c0_i32_0 = arith.constant 0 : i32
    return %arg0, %c0_i32 : i32, i32
  }
  func.func @transform_1(%arg0: i32) -> (i32, i32) {
    %c0_i32 = arith.constant 0 : i32
    %c0_i32_0 = arith.constant 0 : i32
    %c0_i32_1 = arith.constant 0 : i32
    return %c0_i32, %c0_i32_0 : i32, i32
  }
  func.func @transform_2(%arg0: i32) -> (i32, i32) {
    %c0_i32 = arith.constant 0 : i32
    %c0_i32_0 = arith.constant 0 : i32
    %c0_i32_1 = arith.constant 0 : i32
    return %c0_i32, %c0_i32_0 : i32, i32
  }
  func.func @transform_3(%arg0: i32) -> (i32, i32) {
    %c0_i32 = arith.constant 0 : i32
    %c0_i32_0 = arith.constant 0 : i32
    %c0_i32_1 = arith.constant 0 : i32
    return %c0_i32, %c0_i32_0 : i32, i32
  }
  func.func @transform_4(%arg0: i32) -> (i32, i32) {
    %c0_i32 = arith.constant 0 : i32
    %c0_i32_0 = arith.constant 0 : i32
    %c0_i32_1 = arith.constant 0 : i32
    return %c0_i32, %c0_i32_0 : i32, i32
  }
  func.func @transform_5(%arg0: i32) -> (i32, i32) {
    %c0_i32 = arith.constant 0 : i32
    %c0_i32_0 = arith.constant 0 : i32
    return %arg0, %c0_i32 : i32, i32
  }
}

module attributes {stable_mosaic.version = 11 : i64} {
  func.func @_attn_proj_kernel(%arg0: i32, %arg1: i32, %arg2: memref<1x8x96xbf16, #tpu.memory_space<vmem>>, %arg3: memref<32x32xbf16, #tpu.memory_space<vmem>>, %arg4: memref<1x32xf32, #tpu.memory_space<vmem>>, %arg5: memref<1x8x32xf32, #tpu.memory_space<vmem>>, %arg6: memref<1x8x32xf32, #tpu.memory_space<vmem>>, %arg7: memref<1x4x8x8xbf16, #tpu.memory_space<vmem>>) attributes {dimension_semantics = [#tpu.dimension_semantics<parallel>, #tpu.dimension_semantics<arbitrary>], iteration_bounds = array<i64: 2, 1>, scalar_prefetch = 0 : i64, scratch_operands = 0 : i64, tpu.core_type = #tpu.core_type<tc>, window_params = [{transform_indices = @transform_0, window_bounds = array<i64: 1, 8, 96>}, {transform_indices = @transform_1, window_bounds = array<i64: 32, 32>}, {pipeline_mode = #tpu.pipeline_mode<synchronous>, transform_indices = @transform_2, window_bounds = array<i64: 1, 32>}, {transform_indices = @transform_3, window_bounds = array<i64: 1, 8, 32>}, {transform_indices = @transform_4, window_bounds = array<i64: 1, 8, 32>}, {transform_indices = @transform_5, window_bounds = array<i64: 1, 4, 8, 8>}]} {
    %c0_i32 = arith.constant 0 : i32
    %0 = arith.cmpi eq, %arg1, %c0_i32 : i32
    %1 = arith.extui %0 : i1 to i32
    %c0_i32_0 = arith.constant 0 : i32
    %2 = arith.cmpi ne, %1, %c0_i32_0 : i32
    scf.if %2 {
      %c0_41 = arith.constant 0 : index
      %c0_42 = arith.constant 0 : index
      %c0_43 = arith.constant 0 : index
      %100 = vector.load %arg5[%c0_41, %c0_42, %c0_43] : memref<1x8x32xf32, #tpu.memory_space<vmem>>, vector<1x8x32xf32>
      %101 = vector.shape_cast %100 : vector<1x8x32xf32> to vector<8x32xf32>
      %c0_44 = arith.constant 0 : index
      %c0_45 = arith.constant 0 : index
      %102 = vector.load %arg4[%c0_44, %c0_45] : memref<1x32xf32, #tpu.memory_space<vmem>>, vector<1x32xf32>
      %103 = vector.broadcast %102 : vector<1x32xf32> to vector<8x32xf32>
      %104 = arith.addf %101, %103 : vector<8x32xf32>
      %c0_46 = arith.constant 0 : index
      %c0_47 = arith.constant 0 : index
      %c0_48 = arith.constant 0 : index
      %105 = vector.load %arg6[%c0_46, %c0_47, %c0_48] : memref<1x8x32xf32, #tpu.memory_space<vmem>>, vector<1x8x32xf32>
      %106 = vector.shape_cast %105 : vector<1x8x32xf32> to vector<8x32xf32>
      %107 = vector.shape_cast %104 : vector<8x32xf32> to vector<1x8x32xf32>
      tpu.vector_store %arg6[%c0_46, %c0_47, %c0_48], %107 {strides = array<i32>} : memref<1x8x32xf32, #tpu.memory_space<vmem>>, vector<1x8x32xf32>,
    } else {
    }
    %c0 = arith.constant 0 : index
    %c0_1 = arith.constant 0 : index
    %c0_2 = arith.constant 0 : index
    %3 = vector.load %arg2[%c0, %c0_1, %c0_2] : memref<1x8x96xbf16, #tpu.memory_space<vmem>>, vector<1x8x96xbf16>
    %4 = vector.shape_cast %3 : vector<1x8x96xbf16> to vector<8x96xbf16>
    %5 = vector.extract_strided_slice %4 {offsets = [0, 0], sizes = [8, 32], strides = [1, 1]} : vector<8x96xbf16> to vector<8x32xbf16>
    %cst = arith.constant 3.535160e-01 : bf16
    %6 = vector.broadcast %cst : bf16 to vector<8x32xbf16>
    %7 = arith.mulf %5, %6 : vector<8x32xbf16>
    %8 = vector.extract_strided_slice %4 {offsets = [0, 32], sizes = [8, 32], strides = [1, 1]} : vector<8x96xbf16> to vector<8x32xbf16>
    %9 = vector.extract_strided_slice %4 {offsets = [0, 64], sizes = [8, 32], strides = [1, 1]} : vector<8x96xbf16> to vector<8x32xbf16>
    %10 = vector.extract_strided_slice %7 {offsets = [0, 0], sizes = [8, 8], strides = [1, 1]} : vector<8x32xbf16> to vector<8x8xbf16>
    %11 = vector.extract_strided_slice %8 {offsets = [0, 0], sizes = [8, 8], strides = [1, 1]} : vector<8x32xbf16> to vector<8x8xbf16>
    %12 = vector.extract_strided_slice %9 {offsets = [0, 0], sizes = [8, 8], strides = [1, 1]} : vector<8x32xbf16> to vector<8x8xbf16>
    %cst_3 = arith.constant dense<0.000000e+00> : vector<8x8xf32>
    %13 = tpu.matmul %10, %11, %cst_3 {dimension_numbers = #tpu.dot_dimension_numbers<[1], [1], [0], [0], [0, 0, 1, 0], [], []>} : vector<8x8xbf16>, vector<8x8xbf16>, vector<8x8xf32> -> vector<8x8xf32>
    %14 = arith.truncf %13 : vector<8x8xf32> to vector<8x8xbf16>
    %c0_4 = arith.constant 0 : index
    %c0_5 = arith.constant 0 : index
    %c0_6 = arith.constant 0 : index
    %c0_7 = arith.constant 0 : index
    %15 = vector.load %arg7[%c0_4, %c0_5, %c0_6, %c0_7] : memref<1x4x8x8xbf16, #tpu.memory_space<vmem>>, vector<1x1x8x8xbf16>
    %16 = vector.shape_cast %15 : vector<1x1x8x8xbf16> to vector<8x8xbf16>
    %17 = vector.shape_cast %14 : vector<8x8xbf16> to vector<1x1x8x8xbf16>
    tpu.vector_store %arg7[%c0_4, %c0_5, %c0_6, %c0_7], %17 {strides = array<i32>} : memref<1x4x8x8xbf16, #tpu.memory_space<vmem>>, vector<1x1x8x8xbf16>,
    %cst_8 = arith.constant dense<0xFF800000> : vector<8xf32>
    %18 = vector.multi_reduction <maximumf>, %13, %cst_8 [1] : vector<8x8xf32> to vector<8xf32>
    %19 = vector.shape_cast %18 : vector<8xf32> to vector<8x1xf32>
    %20 = vector.broadcast %19 : vector<8x1xf32> to vector<8x8xf32>
    %21 = arith.subf %13, %20 : vector<8x8xf32>
    %22 = math.exp %21 : vector<8x8xf32>
    %cst_9 = arith.constant dense<0.000000e+00> : vector<8xf32>
    %23 = vector.multi_reduction <add>, %22, %cst_9 [1] : vector<8x8xf32> to vector<8xf32>
    %24 = vector.shape_cast %23 : vector<8xf32> to vector<8x1xf32>
    %25 = tpu.reciprocal %24 {approx = true} : vector<8x1xf32> -> vector<8x1xf32>
    %26 = vector.broadcast %25 : vector<8x1xf32> to vector<8x8xf32>
    %27 = arith.mulf %22, %26 : vector<8x8xf32>
    %28 = arith.truncf %27 : vector<8x8xf32> to vector<8x8xbf16>
    %cst_10 = arith.constant dense<0.000000e+00> : vector<8x8xf32>
    %29 = tpu.matmul %28, %12, %cst_10 {dimension_numbers = #tpu.dot_dimension_numbers<[1], [0], [0], [1], [0, 0, 1, 1], [], []>} : vector<8x8xbf16>, vector<8x8xbf16>, vector<8x8xf32> -> vector<8x8xf32>
    %30 = vector.extract_strided_slice %7 {offsets = [0, 8], sizes = [8, 8], strides = [1, 1]} : vector<8x32xbf16> to vector<8x8xbf16>
    %31 = vector.extract_strided_slice %8 {offsets = [0, 8], sizes = [8, 8], strides = [1, 1]} : vector<8x32xbf16> to vector<8x8xbf16>
    %32 = vector.extract_strided_slice %9 {offsets = [0, 8], sizes = [8, 8], strides = [1, 1]} : vector<8x32xbf16> to vector<8x8xbf16>
    %cst_11 = arith.constant dense<0.000000e+00> : vector<8x8xf32>
    %33 = tpu.matmul %30, %31, %cst_11 {dimension_numbers = #tpu.dot_dimension_numbers<[1], [1], [0], [0], [0, 0, 1, 0], [], []>} : vector<8x8xbf16>, vector<8x8xbf16>, vector<8x8xf32> -> vector<8x8xf32>
    %34 = arith.truncf %33 : vector<8x8xf32> to vector<8x8xbf16>
    %c0_12 = arith.constant 0 : index
    %c1 = arith.constant 1 : index
    %c0_13 = arith.constant 0 : index
    %c0_14 = arith.constant 0 : index
    %35 = vector.load %arg7[%c0_12, %c1, %c0_13, %c0_14] : memref<1x4x8x8xbf16, #tpu.memory_space<vmem>>, vector<1x1x8x8xbf16>
    %36 = vector.shape_cast %35 : vector<1x1x8x8xbf16> to vector<8x8xbf16>
    %37 = vector.shape_cast %34 : vector<8x8xbf16> to vector<1x1x8x8xbf16>
    tpu.vector_store %arg7[%c0_12, %c1, %c0_13, %c0_14], %37 {strides = array<i32>} : memref<1x4x8x8xbf16, #tpu.memory_space<vmem>>, vector<1x1x8x8xbf16>,
    %cst_15 = arith.constant dense<0xFF800000> : vector<8xf32>
    %38 = vector.multi_reduction <maximumf>, %33, %cst_15 [1] : vector<8x8xf32> to vector<8xf32>
    %39 = vector.shape_cast %38 : vector<8xf32> to vector<8x1xf32>
    %40 = vector.broadcast %39 : vector<8x1xf32> to vector<8x8xf32>
    %41 = arith.subf %33, %40 : vector<8x8xf32>
    %42 = math.exp %41 : vector<8x8xf32>
    %cst_16 = arith.constant dense<0.000000e+00> : vector<8xf32>
    %43 = vector.multi_reduction <add>, %42, %cst_16 [1] : vector<8x8xf32> to vector<8xf32>
    %44 = vector.shape_cast %43 : vector<8xf32> to vector<8x1xf32>
    %45 = tpu.reciprocal %44 {approx = true} : vector<8x1xf32> -> vector<8x1xf32>
    %46 = vector.broadcast %45 : vector<8x1xf32> to vector<8x8xf32>
    %47 = arith.mulf %42, %46 : vector<8x8xf32>
    %48 = arith.truncf %47 : vector<8x8xf32> to vector<8x8xbf16>
    %cst_17 = arith.constant dense<0.000000e+00> : vector<8x8xf32>
    %49 = tpu.matmul %48, %32, %cst_17 {dimension_numbers = #tpu.dot_dimension_numbers<[1], [0], [0], [1], [0, 0, 1, 1], [], []>} : vector<8x8xbf16>, vector<8x8xbf16>, vector<8x8xf32> -> vector<8x8xf32>
    %50 = vector.extract_strided_slice %7 {offsets = [0, 16], sizes = [8, 8], strides = [1, 1]} : vector<8x32xbf16> to vector<8x8xbf16>
    %51 = vector.extract_strided_slice %8 {offsets = [0, 16], sizes = [8, 8], strides = [1, 1]} : vector<8x32xbf16> to vector<8x8xbf16>
    %52 = vector.extract_strided_slice %9 {offsets = [0, 16], sizes = [8, 8], strides = [1, 1]} : vector<8x32xbf16> to vector<8x8xbf16>
    %cst_18 = arith.constant dense<0.000000e+00> : vector<8x8xf32>
    %53 = tpu.matmul %50, %51, %cst_18 {dimension_numbers = #tpu.dot_dimension_numbers<[1], [1], [0], [0], [0, 0, 1, 0], [], []>} : vector<8x8xbf16>, vector<8x8xbf16>, vector<8x8xf32> -> vector<8x8xf32>
    %54 = arith.truncf %53 : vector<8x8xf32> to vector<8x8xbf16>
    %c0_19 = arith.constant 0 : index
    %c2 = arith.constant 2 : index
    %c0_20 = arith.constant 0 : index
    %c0_21 = arith.constant 0 : index
    %55 = vector.load %arg7[%c0_19, %c2, %c0_20, %c0_21] : memref<1x4x8x8xbf16, #tpu.memory_space<vmem>>, vector<1x1x8x8xbf16>
    %56 = vector.shape_cast %55 : vector<1x1x8x8xbf16> to vector<8x8xbf16>
    %57 = vector.shape_cast %54 : vector<8x8xbf16> to vector<1x1x8x8xbf16>
    tpu.vector_store %arg7[%c0_19, %c2, %c0_20, %c0_21], %57 {strides = array<i32>} : memref<1x4x8x8xbf16, #tpu.memory_space<vmem>>, vector<1x1x8x8xbf16>,
    %cst_22 = arith.constant dense<0xFF800000> : vector<8xf32>
    %58 = vector.multi_reduction <maximumf>, %53, %cst_22 [1] : vector<8x8xf32> to vector<8xf32>
    %59 = vector.shape_cast %58 : vector<8xf32> to vector<8x1xf32>
    %60 = vector.broadcast %59 : vector<8x1xf32> to vector<8x8xf32>
    %61 = arith.subf %53, %60 : vector<8x8xf32>
    %62 = math.exp %61 : vector<8x8xf32>
    %cst_23 = arith.constant dense<0.000000e+00> : vector<8xf32>
    %63 = vector.multi_reduction <add>, %62, %cst_23 [1] : vector<8x8xf32> to vector<8xf32>
    %64 = vector.shape_cast %63 : vector<8xf32> to vector<8x1xf32>
    %65 = tpu.reciprocal %64 {approx = true} : vector<8x1xf32> -> vector<8x1xf32>
    %66 = vector.broadcast %65 : vector<8x1xf32> to vector<8x8xf32>
    %67 = arith.mulf %62, %66 : vector<8x8xf32>
    %68 = arith.truncf %67 : vector<8x8xf32> to vector<8x8xbf16>
    %cst_24 = arith.constant dense<0.000000e+00> : vector<8x8xf32>
    %69 = tpu.matmul %68, %52, %cst_24 {dimension_numbers = #tpu.dot_dimension_numbers<[1], [0], [0], [1], [0, 0, 1, 1], [], []>} : vector<8x8xbf16>, vector<8x8xbf16>, vector<8x8xf32> -> vector<8x8xf32>
    %70 = vector.extract_strided_slice %7 {offsets = [0, 24], sizes = [8, 8], strides = [1, 1]} : vector<8x32xbf16> to vector<8x8xbf16>
    %71 = vector.extract_strided_slice %8 {offsets = [0, 24], sizes = [8, 8], strides = [1, 1]} : vector<8x32xbf16> to vector<8x8xbf16>
    %72 = vector.extract_strided_slice %9 {offsets = [0, 24], sizes = [8, 8], strides = [1, 1]} : vector<8x32xbf16> to vector<8x8xbf16>
    %cst_25 = arith.constant dense<0.000000e+00> : vector<8x8xf32>
    %73 = tpu.matmul %70, %71, %cst_25 {dimension_numbers = #tpu.dot_dimension_numbers<[1], [1], [0], [0], [0, 0, 1, 0], [], []>} : vector<8x8xbf16>, vector<8x8xbf16>, vector<8x8xf32> -> vector<8x8xf32>
    %74 = arith.truncf %73 : vector<8x8xf32> to vector<8x8xbf16>
    %c0_26 = arith.constant 0 : index
    %c3 = arith.constant 3 : index
    %c0_27 = arith.constant 0 : index
    %c0_28 = arith.constant 0 : index
    %75 = vector.load %arg7[%c0_26, %c3, %c0_27, %c0_28] : memref<1x4x8x8xbf16, #tpu.memory_space<vmem>>, vector<1x1x8x8xbf16>
    %76 = vector.shape_cast %75 : vector<1x1x8x8xbf16> to vector<8x8xbf16>
    %77 = vector.shape_cast %74 : vector<8x8xbf16> to vector<1x1x8x8xbf16>
    tpu.vector_store %arg7[%c0_26, %c3, %c0_27, %c0_28], %77 {strides = array<i32>} : memref<1x4x8x8xbf16, #tpu.memory_space<vmem>>, vector<1x1x8x8xbf16>,
    %cst_29 = arith.constant dense<0xFF800000> : vector<8xf32>
    %78 = vector.multi_reduction <maximumf>, %73, %cst_29 [1] : vector<8x8xf32> to vector<8xf32>
    %79 = vector.shape_cast %78 : vector<8xf32> to vector<8x1xf32>
    %80 = vector.broadcast %79 : vector<8x1xf32> to vector<8x8xf32>
    %81 = arith.subf %73, %80 : vector<8x8xf32>
    %82 = math.exp %81 : vector<8x8xf32>
    %cst_30 = arith.constant dense<0.000000e+00> : vector<8xf32>
    %83 = vector.multi_reduction <add>, %82, %cst_30 [1] : vector<8x8xf32> to vector<8xf32>
    %84 = vector.shape_cast %83 : vector<8xf32> to vector<8x1xf32>
    %85 = tpu.reciprocal %84 {approx = true} : vector<8x1xf32> -> vector<8x1xf32>
    %86 = vector.broadcast %85 : vector<8x1xf32> to vector<8x8xf32>
    %87 = arith.mulf %82, %86 : vector<8x8xf32>
    %88 = arith.truncf %87 : vector<8x8xf32> to vector<8x8xbf16>
    %cst_31 = arith.constant dense<0.000000e+00> : vector<8x8xf32>
    %89 = tpu.matmul %88, %72, %cst_31 {dimension_numbers = #tpu.dot_dimension_numbers<[1], [0], [0], [1], [0, 0, 1, 1], [], []>} : vector<8x8xbf16>, vector<8x8xbf16>, vector<8x8xf32> -> vector<8x8xf32>
    %90 = tpu.concatenate %29, %49, %69, %89 in 1 : vector<8x8xf32>, vector<8x8xf32>, vector<8x8xf32>, vector<8x8xf32> -> vector<8x32xf32>
    %c0_32 = arith.constant 0 : index
    %c0_33 = arith.constant 0 : index
    %c0_34 = arith.constant 0 : index
    %91 = vector.load %arg6[%c0_32, %c0_33, %c0_34] : memref<1x8x32xf32, #tpu.memory_space<vmem>>, vector<1x8x32xf32>
    %92 = vector.shape_cast %91 : vector<1x8x32xf32> to vector<8x32xf32>
    %93 = arith.truncf %90 : vector<8x32xf32> to vector<8x32xbf16>
    %c0_35 = arith.constant 0 : index
    %c0_36 = arith.constant 0 : index
    %94 = vector.load %arg3[%c0_35, %c0_36] : memref<32x32xbf16, #tpu.memory_space<vmem>>, vector<32x32xbf16>
    %cst_37 = arith.constant dense<0.000000e+00> : vector<8x32xf32>
    %95 = tpu.matmul %93, %94, %cst_37 {dimension_numbers = #tpu.dot_dimension_numbers<[1], [0], [0], [1], [0, 0, 1, 1], [], []>} : vector<8x32xbf16>, vector<32x32xbf16>, vector<8x32xf32> -> vector<8x32xf32>
    %96 = arith.addf %92, %95 : vector<8x32xf32>
    %c0_38 = arith.constant 0 : index
    %c0_39 = arith.constant 0 : index
    %c0_40 = arith.constant 0 : index
    %97 = vector.load %arg6[%c0_38, %c0_39, %c0_40] : memref<1x8x32xf32, #tpu.memory_space<vmem>>, vector<1x8x32xf32>
    %98 = vector.shape_cast %97 : vector<1x8x32xf32> to vector<8x32xf32>
    %99 = vector.shape_cast %96 : vector<8x32xf32> to vector<1x8x32xf32>
    tpu.vector_store %arg6[%c0_38, %c0_39, %c0_40], %99 {strides = array<i32>} : memref<1x8x32xf32, #tpu.memory_space<vmem>>, vector<1x8x32xf32>,
    return
  }
  func.func @transform_0(%arg0: i32, %arg1: i32) -> (i32, i32, i32) {
    %c0_i32 = arith.constant 0 : i32
    %c0_i32_0 = arith.constant 0 : i32
    return %arg0, %c0_i32, %arg1 : i32, i32, i32
  }
  func.func @transform_1(%arg0: i32, %arg1: i32) -> (i32, i32) {
    %c0_i32 = arith.constant 0 : i32
    %c0_i32_0 = arith.constant 0 : i32
    return %arg1, %c0_i32 : i32, i32
  }
  func.func @transform_2(%arg0: i32, %arg1: i32) -> (i32, i32) {
    %c0_i32 = arith.constant 0 : i32
    %c0_i32_0 = arith.constant 0 : i32
    %c0_i32_1 = arith.constant 0 : i32
    return %c0_i32, %c0_i32_0 : i32, i32
  }
  func.func @transform_3(%arg0: i32, %arg1: i32) -> (i32, i32, i32) {
    %c0_i32 = arith.constant 0 : i32
    %c0_i32_0 = arith.constant 0 : i32
    %c0_i32_1 = arith.constant 0 : i32
    return %arg0, %c0_i32, %c0_i32_0 : i32, i32, i32
  }
  func.func @transform_4(%arg0: i32, %arg1: i32) -> (i32, i32, i32) {
    %c0_i32 = arith.constant 0 : i32
    %c0_i32_0 = arith.constant 0 : i32
    %c0_i32_1 = arith.constant 0 : i32
    return %arg0, %c0_i32, %c0_i32_0 : i32, i32, i32
  }
  func.func @transform_5(%arg0: i32, %arg1: i32) -> (i32, i32, i32, i32) {
    %c0_i32 = arith.constant 0 : i32
    %c0_i32_0 = arith.constant 0 : i32
    %c0_i32_1 = arith.constant 0 : i32
    return %arg0, %arg1, %c0_i32, %c0_i32_0 : i32, i32, i32, i32
  }
}

module attributes {stable_mosaic.version = 11 : i64} {
  func.func @kernel(%arg0: i32, %arg1: memref<16x32xf32, #tpu.memory_space<vmem>>, %arg2: memref<1x32xf32, #tpu.memory_space<vmem>>, %arg3: memref<1x32xf32, #tpu.memory_space<vmem>>, %arg4: memref<32x96xbf16, #tpu.memory_space<vmem>>, %arg5: memref<1x96xf32, #tpu.memory_space<vmem>>, %arg6: memref<16x96xbf16, #tpu.memory_space<vmem>>) attributes {dimension_semantics = [#tpu.dimension_semantics<parallel>], iteration_bounds = array<i64: 1>, scalar_prefetch = 0 : i64, scratch_operands = 0 : i64, tpu.core_type = #tpu.core_type<tc>, window_params = [{transform_indices = @transform_0, window_bounds = array<i64: 16, 32>}, {pipeline_mode = #tpu.pipeline_mode<synchronous>, transform_indices = @transform_1, window_bounds = array<i64: 1, 32>}, {pipeline_mode = #tpu.pipeline_mode<synchronous>, transform_indices = @transform_2, window_bounds = array<i64: 1, 32>}, {pipeline_mode = #tpu.pipeline_mode<synchronous>, transform_indices = @transform_3, window_bounds = array<i64: 32, 96>}, {pipeline_mode = #tpu.pipeline_mode<synchronous>, transform_indices = @transform_4, window_bounds = array<i64: 1, 96>}, {transform_indices = @transform_5, window_bounds = array<i64: 16, 96>}]} {
    %c0 = arith.constant 0 : index
    %c0_0 = arith.constant 0 : index
    %0 = vector.load %arg1[%c0, %c0_0] : memref<16x32xf32, #tpu.memory_space<vmem>>, vector<16x32xf32>
    %cst = arith.constant dense<0.000000e+00> : vector<16xf32>
    %1 = vector.multi_reduction <add>, %0, %cst [1] : vector<16x32xf32> to vector<16xf32>
    %2 = vector.shape_cast %1 : vector<16xf32> to vector<16x1xf32>
    %cst_1 = arith.constant 3.200000e+01 : f32
    %3 = vector.broadcast %cst_1 : f32 to vector<16x1xf32>
    %4 = arith.divf %2, %3 : vector<16x1xf32>
    %5 = vector.broadcast %4 : vector<16x1xf32> to vector<16x32xf32>
    %6 = arith.subf %0, %5 : vector<16x32xf32>
    %7 = arith.mulf %6, %6 : vector<16x32xf32>
    %cst_2 = arith.constant dense<0.000000e+00> : vector<16xf32>
    %8 = vector.multi_reduction <add>, %7, %cst_2 [1] : vector<16x32xf32> to vector<16xf32>
    %9 = vector.shape_cast %8 : vector<16xf32> to vector<16x1xf32>
    %cst_3 = arith.constant 0.0322580636 : f32
    %10 = vector.broadcast %cst_3 : f32 to vector<16x1xf32>
    %11 = arith.mulf %9, %10 : vector<16x1xf32>
    %12 = math.sqrt %11 : vector<16x1xf32>
    %cst_4 = arith.constant 9.99999997E-7 : f32
    %13 = vector.broadcast %cst_4 : f32 to vector<16x1xf32>
    %14 = arith.addf %12, %13 : vector<16x1xf32>
    %15 = tpu.reciprocal %14 {approx = true} : vector<16x1xf32> -> vector<16x1xf32>
    %c0_5 = arith.constant 0 : index
    %c0_6 = arith.constant 0 : index
    %16 = vector.load %arg2[%c0_5, %c0_6] : memref<1x32xf32, #tpu.memory_space<vmem>>, vector<1x32xf32>
    %17 = vector.broadcast %16 : vector<1x32xf32> to vector<16x32xf32>
    %18 = arith.mulf %17, %6 : vector<16x32xf32>
    %19 = vector.broadcast %15 : vector<16x1xf32> to vector<16x32xf32>
    %20 = arith.mulf %18, %19 : vector<16x32xf32>
    %c0_7 = arith.constant 0 : index
    %c0_8 = arith.constant 0 : index
    %21 = vector.load %arg3[%c0_7, %c0_8] : memref<1x32xf32, #tpu.memory_space<vmem>>, vector<1x32xf32>
    %22 = vector.broadcast %21 : vector<1x32xf32> to vector<16x32xf32>
    %23 = arith.addf %20, %22 : vector<16x32xf32>
    %24 = arith.truncf %23 : vector<16x32xf32> to vector<16x32xbf16>
    %c0_9 = arith.constant 0 : index
    %c0_10 = arith.constant 0 : index
    %25 = vector.load %arg4[%c0_9, %c0_10] : memref<32x96xbf16, #tpu.memory_space<vmem>>, vector<32x96xbf16>
    %cst_11 = arith.constant dense<0.000000e+00> : vector<16x96xf32>
    %26 = tpu.matmul %24, %25, %cst_11 {dimension_numbers = #tpu.dot_dimension_numbers<[1], [0], [0], [1], [0, 0, 1, 1], [], []>} : vector<16x32xbf16>, vector<32x96xbf16>, vector<16x96xf32> -> vector<16x96xf32>
    %c0_12 = arith.constant 0 : index
    %c0_13 = arith.constant 0 : index
    %27 = vector.load %arg5[%c0_12, %c0_13] : memref<1x96xf32, #tpu.memory_space<vmem>>, vector<1x96xf32>
    %28 = vector.broadcast %27 : vector<1x96xf32> to vector<16x96xf32>
    %29 = arith.addf %26, %28 : vector<16x96xf32>
    %30 = arith.truncf %29 : vector<16x96xf32> to vector<16x96xbf16>
    %c0_14 = arith.constant 0 : index
    %c0_15 = arith.constant 0 : index
    %31 = vector.load %arg6[%c0_14, %c0_15] : memref<16x96xbf16, #tpu.memory_space<vmem>>, vector<16x96xbf16>
    tpu.vector_store %arg6[%c0_14, %c0_15], %30 {strides = array<i32>} : memref<16x96xbf16, #tpu.memory_space<vmem>>, vector<16x96xbf16>,
    return
  }
  func.func @transform_0(%arg0: i32) -> (i32, i32) {
    %c0_i32 = arith.constant 0 : i32
    %c0_i32_0 = arith.constant 0 : i32
    return %arg0, %c0_i32 : i32, i32
  }
  func.func @transform_1(%arg0: i32) -> (i32, i32) {
    %c0_i32 = arith.constant 0 : i32
    %c0_i32_0 = arith.constant 0 : i32
    %c0_i32_1 = arith.constant 0 : i32
    return %c0_i32, %c0_i32_0 : i32, i32
  }
  func.func @transform_2(%arg0: i32) -> (i32, i32) {
    %c0_i32 = arith.constant 0 : i32
    %c0_i32_0 = arith.constant 0 : i32
    %c0_i32_1 = arith.constant 0 : i32
    return %c0_i32, %c0_i32_0 : i32, i32
  }
  func.func @transform_3(%arg0: i32) -> (i32, i32) {
    %c0_i32 = arith.constant 0 : i32
    %c0_i32_0 = arith.constant 0 : i32
    %c0_i32_1 = arith.constant 0 : i32
    return %c0_i32, %c0_i32_0 : i32, i32
  }
  func.func @transform_4(%arg0: i32) -> (i32, i32) {
    %c0_i32 = arith.constant 0 : i32
    %c0_i32_0 = arith.constant 0 : i32
    %c0_i32_1 = arith.constant 0 : i32
    return %c0_i32, %c0_i32_0 : i32, i32
  }
  func.func @transform_5(%arg0: i32) -> (i32, i32) {
    %c0_i32 = arith.constant 0 : i32
    %c0_i32_0 = arith.constant 0 : i32
    return %arg0, %c0_i32 : i32, i32
  }
}

module attributes {stable_mosaic.version = 11 : i64} {
  func.func @kernel(%arg0: i32, %arg1: memref<16x64xbf16, #tpu.memory_space<vmem>>, %arg2: memref<64x32xbf16, #tpu.memory_space<vmem>>, %arg3: memref<1x32xf32, #tpu.memory_space<vmem>>, %arg4: memref<16x32xf32, #tpu.memory_space<vmem>>, %arg5: memref<16x32xf32, #tpu.memory_space<vmem>>) attributes {dimension_semantics = [#tpu.dimension_semantics<parallel>], iteration_bounds = array<i64: 1>, scalar_prefetch = 0 : i64, scratch_operands = 0 : i64, tpu.core_type = #tpu.core_type<tc>, window_params = [{transform_indices = @transform_0, window_bounds = array<i64: 16, 64>}, {pipeline_mode = #tpu.pipeline_mode<synchronous>, transform_indices = @transform_1, window_bounds = array<i64: 64, 32>}, {pipeline_mode = #tpu.pipeline_mode<synchronous>, transform_indices = @transform_2, window_bounds = array<i64: 1, 32>}, {transform_indices = @transform_3, window_bounds = array<i64: 16, 32>}, {transform_indices = @transform_4, window_bounds = array<i64: 16, 32>}]} {
    %c0 = arith.constant 0 : index
    %c0_0 = arith.constant 0 : index
    %0 = vector.load %arg1[%c0, %c0_0] : memref<16x64xbf16, #tpu.memory_space<vmem>>, vector<16x64xbf16>
    %c0_1 = arith.constant 0 : index
    %c0_2 = arith.constant 0 : index
    %1 = vector.load %arg2[%c0_1, %c0_2] : memref<64x32xbf16, #tpu.memory_space<vmem>>, vector<64x32xbf16>
    %cst = arith.constant dense<0.000000e+00> : vector<16x32xf32>
    %2 = tpu.matmul %0, %1, %cst {dimension_numbers = #tpu.dot_dimension_numbers<[1], [0], [0], [1], [0, 0, 1, 1], [], []>} : vector<16x64xbf16>, vector<64x32xbf16>, vector<16x32xf32> -> vector<16x32xf32>
    %c0_3 = arith.constant 0 : index
    %c0_4 = arith.constant 0 : index
    %3 = vector.load %arg3[%c0_3, %c0_4] : memref<1x32xf32, #tpu.memory_space<vmem>>, vector<1x32xf32>
    %4 = vector.broadcast %3 : vector<1x32xf32> to vector<16x32xf32>
    %5 = arith.addf %2, %4 : vector<16x32xf32>
    %c0_5 = arith.constant 0 : index
    %c0_6 = arith.constant 0 : index
    %6 = vector.load %arg4[%c0_5, %c0_6] : memref<16x32xf32, #tpu.memory_space<vmem>>, vector<16x32xf32>
    %7 = arith.addf %5, %6 : vector<16x32xf32>
    %c0_7 = arith.constant 0 : index
    %c0_8 = arith.constant 0 : index
    %8 = vector.load %arg5[%c0_7, %c0_8] : memref<16x32xf32, #tpu.memory_space<vmem>>, vector<16x32xf32>
    tpu.vector_store %arg5[%c0_7, %c0_8], %7 {strides = array<i32>} : memref<16x32xf32, #tpu.memory_space<vmem>>, vector<16x32xf32>,
    return
  }
  func.func @transform_0(%arg0: i32) -> (i32, i32) {
    %c0_i32 = arith.constant 0 : i32
    %c0_i32_0 = arith.constant 0 : i32
    return %arg0, %c0_i32 : i32, i32
  }
  func.func @transform_1(%arg0: i32) -> (i32, i32) {
    %c0_i32 = arith.constant 0 : i32
    %c0_i32_0 = arith.constant 0 : i32
    %c0_i32_1 = arith.constant 0 : i32
    return %c0_i32, %c0_i32_0 : i32, i32
  }
  func.func @transform_2(%arg0: i32) -> (i32, i32) {
    %c0_i32 = arith.constant 0 : i32
    %c0_i32_0 = arith.constant 0 : i32
    %c0_i32_1 = arith.constant 0 : i32
    return %c0_i32, %c0_i32_0 : i32, i32
  }
  func.func @transform_3(%arg0: i32) -> (i32, i32) {
    %c0_i32 = arith.constant 0 : i32
    %c0_i32_0 = arith.constant 0 : i32
    return %arg0, %c0_i32 : i32, i32
  }
  func.func @transform_4(%arg0: i32) -> (i32, i32) {
    %c0_i32 = arith.constant 0 : i32
    %c0_i32_0 = arith.constant 0 : i32
    return %arg0, %c0_i32 : i32, i32
  }
}

</mosaic_0001>

<bundles_post_ra>
// kernel: encoder_layer_forward.6
= control target key start
LH: loop header
LB: loop body
LE: loop exit
PB: predicated region body
PF: predicated region fallthrough
CT: control target
= control target key end

     0   :  { %vm23_vm0 = vcmask 261120   ;;  %v201_v14 = vmov 0.0   ;;  %vm202_vm1 = vmmov 0   ;;  %vm161_vm6 = vcmask 519168   ;;  %s265_s0 = inlined_call_operand.vmem [shape: f32[16,32], index: 0, kind: input, shape index: {}]   ;;  %s266_s3 = inlined_call_operand.vmem [shape: bf16[32,64], index: 3, kind: input, shape index: {}]   ;;  %s267_s1 = inlined_call_operand.vmem [shape: f32[1,32], index: 1, kind: input, shape index: {}]   ;;  %s268_s2 = inlined_call_operand.vmem [shape: f32[1,32], index: 2, kind: input, shape index: {}]   ;;  %s269_s4 = inlined_call_operand.vmem [shape: f32[1,64], index: 4, kind: input, shape index: {}]   ;;  %s270_s5 = inlined_call_operand.vmem [shape: bf16[16,64], index: 5, kind: output, shape index: {}]  }
   0x1   :  { %v21_v0 = vld [vmem:[%s265_s0] sm:$0xff]  ;;  %v22_v1 = vld [vmem:[%s265_s0 + $0x8] sm:$0xff]  ;;  %181 = vmatprep.subr.bf16.mxu0 %v201_v14  ;;  %185 = vmatprep.mubr.msk.bf16.mxu0 %vm202_vm1, %v201_v14 }
   0x2   :  { %v24_v2 = vsel %vm23_vm0, %v21_v0, 0.0  ;;  %v27_v3 = vsel %vm23_vm0, %v22_v1, 0.0  ;;  %v191_v15 = vld [vmem:[%s266_s3] sm:$0xff]   ;;  %v192_v16 = vld [vmem:[%s266_s3 + $0x8] sm:$0xff]  }
   0x3   :  { %25 = vadd.xlane.f32.xlu0 %v24_v2  ;;  %182 = vmatpush3.bf16.msra.mxu0 %v191_v15  ;;  %v168_v33 = vld [vmem:[%s267_s1] ss:$0 sm:$0xff] }
   0x4   :  { %183 = vmatprep.subr.bf16.mxu0 %v201_v14  ;;  %v169_v39 = vld [vmem:[%s268_s2] ss:$0 sm:$0xff] }
   0x5   :  { %v170_v44 = vld [vmem:[%s269_s4] ss:$0 sm:$0xff] }
   0x7   :  { %28 = vadd.xlane.f32.xlu0 %v27_v3  ;;  %184 = vmatpush3.bf16.msra.mxu0 %v192_v16 }
  0x90   :  { %v26_v4 = vpop.xlane.xlu0 %25 }
  0x91   :  { %v31_v5 = vmul.f32 0.03125, %v26_v4 }
  0x93   :  { %v33_v6 = vsub.f32 %v21_v0, %v31_v5 }
  0x94   :  { %v29_v7 = vpop.xlane.xlu0 %28 }
  0x95   :  { %v32_v8 = vmul.f32 0.03125, %v29_v7  ;;  %v35_v9 = vmul.f32 %v33_v6, %v33_v6  ;;  %v70_v35 = vmul.f32 %v168_v33, %v33_v6 }
  0x97   :  { %v34_v10 = vsub.f32 %v22_v1, %v32_v8  ;;  %v37_v11 = vsel %vm23_vm0, %v35_v9, 0.0 }
  0x98   :  { %38 = vadd.xlane.f32.xlu1 %v37_v11 }
  0x99   :  { %v36_v12 = vmul.f32 %v34_v10, %v34_v10  ;;  %v71_v36 = vmul.f32 %v168_v33, %v34_v10 }
  0x9b   :  { %v40_v13 = vsel %vm23_vm0, %v36_v12, 0.0 }
  0x9c   :  { %41 = vadd.xlane.f32.xlu1 %v40_v13 }
 0x125   :  { %v39_v17 = vpop.xlane.xlu1 %38 }
 0x126   :  { %v43_v18 = vmul.f32 0.032258064, %v39_v17 }
 0x128   :  { %193 = vrsqrt.f32 %v43_v18  ;;  %vm47_vm2 = vcmp.eq.f32.partialorder %v43_v18, inf  ;;  %v50_v23 = vand.u32 2147483648, %v43_v18  ;;  %vm49_vm3 = vcmp.eq.f32.partialorder %v43_v18, 0.0 }
 0x129   :  { %v42_v19 = vpop.xlane.xlu1 %41 }
 0x12a   :  { %v44_v20 = vmul.f32 0.032258064, %v42_v19 }
 0x12c   :  { %195 = vrsqrt.f32 %v44_v20  ;;  %vm54_vm4 = vcmp.eq.f32.partialorder %v44_v20, inf  ;;  %v57_v29 = vand.u32 2147483648, %v44_v20  ;;  %vm56_vm5 = vcmp.eq.f32.partialorder %v44_v20, 0.0 }
 0x132   :  { %v194_v21 = vpop.eup %193 }
 0x133   :  { %v46_v22 = vmul.f32 %v194_v21, %v43_v18 }
 0x135   :  { %v48_v24 = vsel %vm47_vm2, %v43_v18, %v46_v22 }
 0x136   :  { %v196_v25 = vpop.eup %195  ;;  %v51_v26 = vsel %vm49_vm3, %v50_v23, %v48_v24 }
 0x137   :  { %v59_v27 = vadd.f32 1e-06, %v51_v26  ;;  %v53_v28 = vmul.f32 %v196_v25, %v44_v20 }
 0x139   :  { %197 = vrcp.f32 %v59_v27  ;;  %v55_v30 = vsel %vm54_vm4, %v44_v20, %v53_v28 }
 0x13a   :  { %v58_v31 = vsel %vm56_vm5, %v57_v29, %v55_v30 }
 0x13b   :  { %v60_v32 = vadd.f32 1e-06, %v58_v31 }
 0x13d   :  { %199 = vrcp.f32 %v60_v32 }
 0x143   :  { %v198_v34 = vpop.eup %197 }
 0x144   :  { %v72_v37 = vmul.f32 %v198_v34, %v70_v35 }
 0x146   :  { %v81_v41 = vadd.f32 %v169_v39, %v72_v37 }
 0x147   :  { %v200_v38 = vpop.eup %199 }
 0x148   :  { %v73_v40 = vmul.f32 %v200_v38, %v71_v36 }
 0x14a   :  { %v82_v42 = vadd.f32 %v169_v39, %v73_v40 }
 0x14c   :  { %v83_v43 = vpack.c.bf16 %v82_v42, %v81_v41 }
 0x14e   :  { %186 = vmatmul.mubr.msk.bf16.vlgmr.msra.gmra.mrb[0].mxu0 %vm23_vm0, %v83_v43 }
 0x221   :  { %v144_v45 = vpop.f32.mrb[0].mxu0 }
 0x222   :  { %v145_v46 = vadd.f32 %v170_v44, %v144_v45  ;;  %v187_v47 = vpop.f32.mrb[1].mxu0 }
 0x223   :  { %v147_v48 = vpop.f32.mrb[2].mxu0 }
 0x224   :  { %v151_v49 = vmax.f32 %v145_v46, 0.0  ;;  %v148_v50 = vadd.f32 %v170_v44, %v147_v48  ;;  %v188_v51 = vpop.f32.mrb[3].mxu0 }
 0x226   :  { %v176_v52 = vpack.c.bf16 %v151_v49, %v151_v49  ;;  %v152_v53 = vmax.f32 %v148_v50, 0.0 }
 0x228   :  { %162 = vst.msk [vmem:[%s270_s5] sm:$0xf] %vm161_vm6, %v176_v52  ;;  %v177_v54 = vpack.c.bf16 %v152_v53, %v152_v53 }
 0x22a   :  { %163 = vst.msk [vmem:[%s270_s5 + $0x4] sm:$0xf] %vm161_vm6, %v177_v54 }

// kernel: encoder_layer_forward.4
= control target key start
LH: loop header
LB: loop body
LE: loop exit
PB: predicated region body
PF: predicated region fallthrough
CT: control target
= control target key end

     0   :  { %vm23_vm0 = vcmask 261120   ;;  %v199_v14 = vmov 0.0   ;;  %vm200_vm1 = vmmov 0   ;;  %vm159_vm6 = vcmask 781312   ;;  %s263_s0 = inlined_call_operand.vmem [shape: f32[16,32], index: 0, kind: input, shape index: {}]   ;;  %s264_s3 = inlined_call_operand.vmem [shape: bf16[32,96], index: 3, kind: input, shape index: {}]   ;;  %s265_s1 = inlined_call_operand.vmem [shape: f32[1,32], index: 1, kind: input, shape index: {}]   ;;  %s266_s2 = inlined_call_operand.vmem [shape: f32[1,32], index: 2, kind: input, shape index: {}]   ;;  %s267_s4 = inlined_call_operand.vmem [shape: f32[1,96], index: 4, kind: input, shape index: {}]   ;;  %s268_s5 = inlined_call_operand.vmem [shape: bf16[16,96], index: 5, kind: output, shape index: {}]  }
   0x1   :  { %v21_v0 = vld [vmem:[%s263_s0] sm:$0xff]  ;;  %v22_v1 = vld [vmem:[%s263_s0 + $0x8] sm:$0xff]  ;;  %179 = vmatprep.subr.bf16.mxu0 %v199_v14  ;;  %183 = vmatprep.mubr.msk.bf16.mxu0 %vm200_vm1, %v199_v14 }
   0x2   :  { %v24_v2 = vsel %vm23_vm0, %v21_v0, 0.0  ;;  %v27_v3 = vsel %vm23_vm0, %v22_v1, 0.0  ;;  %v189_v15 = vld [vmem:[%s264_s3] sm:$0xff]   ;;  %v190_v16 = vld [vmem:[%s264_s3 + $0x8] sm:$0xff]  }
   0x3   :  { %25 = vadd.xlane.f32.xlu0 %v24_v2  ;;  %180 = vmatpush3.bf16.msra.mxu0 %v189_v15  ;;  %v166_v33 = vld [vmem:[%s265_s1] ss:$0 sm:$0xff] }
   0x4   :  { %181 = vmatprep.subr.bf16.mxu0 %v199_v14  ;;  %v167_v39 = vld [vmem:[%s266_s2] ss:$0 sm:$0xff] }
   0x5   :  { %v168_v44 = vld [vmem:[%s267_s4] ss:$0 sm:$0xff] }
   0x7   :  { %28 = vadd.xlane.f32.xlu0 %v27_v3  ;;  %182 = vmatpush3.bf16.msra.mxu0 %v190_v16 }
  0x90   :  { %v26_v4 = vpop.xlane.xlu0 %25 }
  0x91   :  { %v31_v5 = vmul.f32 0.03125, %v26_v4 }
  0x93   :  { %v33_v6 = vsub.f32 %v21_v0, %v31_v5 }
  0x94   :  { %v29_v7 = vpop.xlane.xlu0 %28 }
  0x95   :  { %v32_v8 = vmul.f32 0.03125, %v29_v7  ;;  %v35_v9 = vmul.f32 %v33_v6, %v33_v6  ;;  %v70_v35 = vmul.f32 %v166_v33, %v33_v6 }
  0x97   :  { %v34_v10 = vsub.f32 %v22_v1, %v32_v8  ;;  %v37_v11 = vsel %vm23_vm0, %v35_v9, 0.0 }
  0x98   :  { %38 = vadd.xlane.f32.xlu1 %v37_v11 }
  0x99   :  { %v36_v12 = vmul.f32 %v34_v10, %v34_v10  ;;  %v71_v36 = vmul.f32 %v166_v33, %v34_v10 }
  0x9b   :  { %v40_v13 = vsel %vm23_vm0, %v36_v12, 0.0 }
  0x9c   :  { %41 = vadd.xlane.f32.xlu1 %v40_v13 }
 0x125   :  { %v39_v17 = vpop.xlane.xlu1 %38 }
 0x126   :  { %v43_v18 = vmul.f32 0.032258064, %v39_v17 }
 0x128   :  { %191 = vrsqrt.f32 %v43_v18  ;;  %vm47_vm2 = vcmp.eq.f32.partialorder %v43_v18, inf  ;;  %v50_v23 = vand.u32 2147483648, %v43_v18  ;;  %vm49_vm3 = vcmp.eq.f32.partialorder %v43_v18, 0.0 }
 0x129   :  { %v42_v19 = vpop.xlane.xlu1 %41 }
 0x12a   :  { %v44_v20 = vmul.f32 0.032258064, %v42_v19 }
 0x12c   :  { %193 = vrsqrt.f32 %v44_v20  ;;  %vm54_vm4 = vcmp.eq.f32.partialorder %v44_v20, inf  ;;  %v57_v29 = vand.u32 2147483648, %v44_v20  ;;  %vm56_vm5 = vcmp.eq.f32.partialorder %v44_v20, 0.0 }
 0x132   :  { %v192_v21 = vpop.eup %191 }
 0x133   :  { %v46_v22 = vmul.f32 %v192_v21, %v43_v18 }
 0x135   :  { %v48_v24 = vsel %vm47_vm2, %v43_v18, %v46_v22 }
 0x136   :  { %v194_v25 = vpop.eup %193  ;;  %v51_v26 = vsel %vm49_vm3, %v50_v23, %v48_v24 }
 0x137   :  { %v59_v27 = vadd.f32 1e-06, %v51_v26  ;;  %v53_v28 = vmul.f32 %v194_v25, %v44_v20 }
 0x139   :  { %195 = vrcp.f32 %v59_v27  ;;  %v55_v30 = vsel %vm54_vm4, %v44_v20, %v53_v28 }
 0x13a   :  { %v58_v31 = vsel %vm56_vm5, %v57_v29, %v55_v30 }
 0x13b   :  { %v60_v32 = vadd.f32 1e-06, %v58_v31 }
 0x13d   :  { %197 = vrcp.f32 %v60_v32 }
 0x143   :  { %v196_v34 = vpop.eup %195 }
 0x144   :  { %v72_v37 = vmul.f32 %v196_v34, %v70_v35 }
 0x146   :  { %v81_v41 = vadd.f32 %v167_v39, %v72_v37 }
 0x147   :  { %v198_v38 = vpop.eup %197 }
 0x148   :  { %v73_v40 = vmul.f32 %v198_v38, %v71_v36 }
 0x14a   :  { %v82_v42 = vadd.f32 %v167_v39, %v73_v40 }
 0x14c   :  { %v83_v43 = vpack.c.bf16 %v82_v42, %v81_v41 }
 0x14e   :  { %184 = vmatmul.mubr.msk.bf16.vlgmr.msra.gmra.mrb[0].mxu0 %vm23_vm0, %v83_v43 }
 0x221   :  { %v144_v45 = vpop.f32.mrb[0].mxu0 }
 0x222   :  { %v145_v46 = vadd.f32 %v168_v44, %v144_v45  ;;  %v185_v47 = vpop.f32.mrb[1].mxu0 }
 0x223   :  { %v147_v48 = vpop.f32.mrb[2].mxu0 }
 0x224   :  { %v174_v49 = vpack.c.bf16 %v145_v46, %v145_v46  ;;  %v148_v50 = vadd.f32 %v168_v44, %v147_v48  ;;  %v186_v51 = vpop.f32.mrb[3].mxu0 }
 0x226   :  { %160 = vst.msk [vmem:[%s268_s5] sm:$0xf] %vm159_vm6, %v174_v49  ;;  %v175_v52 = vpack.c.bf16 %v148_v50, %v148_v50 }
 0x228   :  { %161 = vst.msk [vmem:[%s268_s5 + $0x4] sm:$0xf] %vm159_vm6, %v175_v52 }

// kernel: encoder_layer_forward.5
= control target key start
LH: loop header
LB: loop body
LE: loop exit
PB: predicated region body
PF: predicated region fallthrough
CT: control target
= control target key end

     0   :  { %11 = vsyncpa [#allocation3], 0  ;;  %s1557_s0 = inlined_call_operand.vmem [shape: bf16[2,8,96], index: 0, kind: input, shape index: {}]   ;;  %s1558_s1 = inlined_call_operand.vmem [shape: bf16[32,32], index: 1, kind: input, shape index: {}]   ;;  %s1559_s2 = inlined_call_operand.vmem [shape: f32[1,32], index: 2, kind: input, shape index: {}]   ;;  %s1560_s3 = inlined_call_operand.vmem [shape: f32[2,8,32], index: 3, kind: input, shape index: {}]   ;;  %s1561_s4 = inlined_call_operand.vmem [shape: f32[2,8,32], index: 4, kind: output, shape index: {0}]   ;;  %s1562_s5 = inlined_call_operand.hbm [shape: bf16[2,4,8,8], index: 5, kind: output, shape index: {1}]  }
   0x1   :  { %13 = vsyncpa [#allocation3 + $0x1], 0  ;;  %s1331_s18 = smov 0   ;;  %s1333_s19 = smov 0  }
   0x2   :  { %s1335_s20 = smov 0   ;;  %s1337_s21 = smov 0  }
   0x3   :  { %s1339_s22 = smov 0   ;;  %s1341_s23 = smov 0  }
   0x4 LB: > { %s1004_s24 = sadd.s32 4294967295, %s1281_s23   ;;  %s1005_s25 = sadd.s32 4294967294, %s1281_s23   ;;  %s1281_s23 = sphi %s1341_s23, %s19_s23   ;;  %s1277_s22 = sphi %s1339_s22, %s1569_s22   ;;  %s1273_s21 = sphi %s1337_s21, %s1568_s21   ;;  %s1269_s20 = sphi %s1335_s20, %s1567_s20   ;;  %s1265_s19 = sphi %s1333_s19, %s1566_s19   ;;  %s1261_s18 = sphi %s1331_s18, %s1565_s18  }
   0x5   : > { %s31_s26 = sadd.s32 1, %s1277_s22  ;;  %s167_s27 = sadd.s32 1, %s1269_s20 }
   0x6   : > { %p33_p0 = scmp.ge.s32.totalorder %s31_s26, 2  ;;  %p177_p1 = scmp.ne.s32.totalorder %s1269_s20, %s1265_s19 }
   0x7   : > { %p178_p2 = scmp.eq.s32.totalorder %s1004_s24, 1  ;;  %p183_p3 = scmp.ne.s32.totalorder %s1265_s19, %s1261_s18 }
   0x8   : > { %s1571_s26 = smov (%p33_p0, %s31_s26), 0  ;;  %p184_p5 = scmp.eq.s32.totalorder %s1005_s25, 1 }
   0x9   : > { %p1371_p4 = por %p178_p2, %p177_p1  ;;  %s162_s29 = ssub.s32 %s1277_s22, %s1571_s26 }
   0xa   : > { %p1009_p6 = scmp.ge.s32.totalorder %s1281_s23, 1  ;;  %p165_p7 = scmp.eq.s32.totalorder %s162_s29, 0 }
   0xb   : > { %p1378_p8 = por %p184_p5, %p183_p3  ;;  %p231_p9 = scmp.lt.s32.totalorder %s1281_s23, 3 }
   0xc   : > { %s1384_s6 = scalar_select %p165_p7, %s1269_s20, %s167_s27  }
   0xd   : > { %p232_p10 = pnand %p1009_p6, %p231_p9 }
   0xe   : > { %p274_p11 = scmp.lt.s32.totalorder (!%p232_p10), %s1273_s21, 1  ;;  %v1283_v0 = vmov (!%p232_p10), 0.0   ;;  %vm1284_vm0 = vmmov (!%p232_p10), 0   ;;  %s1285_s12 = smov (!%p232_p10), 96   ;;  %vm320_vm1 = vcmask (!%p232_p10), 64512   ;;  %vm368_vm2 = vcmask (!%p232_p10), 60416  }
   0xf   : > { %235 = sbr.rel (%p232_p10) target bundleno = 1822 (0x71e), region = 36  ;;  %1056 = vmatprep.subr.bf16.mxu0 (!%p232_p10), %v1283_v0  ;;  %1058 = vmatprep.mubr.msk.bf16.mxu0 (!%p232_p10), %vm1284_vm0, %v1283_v0  ;;  %s1286_s13 = smov (!%p232_p10), 64   ;;  %vm387_vm3 = vcmask (!%p232_p10), 1043456   ;;  %vm311_vm4 = vcmask (!%p232_p10), 261120   ;;  %vm786_vm5 = vcmask (!%p232_p10), 130048   ;;  %vm788_vm6 = vcmask (!%p232_p10), 195584  }
  0x10   : > { %1062 = vmatprep.subr.bf16.mxu1 (!%p232_p10), %v1283_v0  ;;  %1064 = vmatprep.mubr.msk.bf16.mxu1 (!%p232_p10), %vm1284_vm0, %v1283_v0  ;;  %s1287_s14 = smov (!%p232_p10), 88   ;;  %s271_s15 = sand.u32 (!%p232_p10), 1, %s1265_s19  }
  0x11   : > { %s1010_s16 = sshll.u32 (!%p232_p10), %s271_s15, 4  ;;  %s1288_s24 = smov (!%p232_p10), 72  }
  0x12   : > { %s1415_s17 = scalar_lea.vmem (!%p232_p10), [#allocation2], %s1010_s16  ;;  %s1289_s25 = smov (!%p232_p10), 120  }
  0x13   : > { %s1290_s27 = smov (!%p232_p10), 80   ;;  %s1291_s29 = smov (!%p232_p10), 112  }
  0x14   : > { %s1293_s9 = smov (!%p232_p10), 56   ;;  %s1294_s10 = smov (!%p232_p10), 48  }
  0x16   : > { %s1391_s7 = scalar_select %p274_p11, %s1273_s21, 1 }
  0x18   : > { %s1011_s8 = sshll.u32 %s1391_s7, 2 }
  0x19   : > { %s280_s11 = scalar_lea.vmem %s1557_s0, %s1011_s8  ;;  %s1292_s8 = smov 104  }
  0x1a   : > { %v313_v1 = vld [vmem:[%s280_s11] sm:$0xf]  ;;  %s1295_s11 = smov 40  }
  0x1b   : > { %v1400_v2 = vcombine.low %v313_v1, %v313_v1  ;;  %v314_v5 = vmul.bf16 1052065461, %v313_v1 }
  0x1d   : > { %318 = vrot.lane.b32.xlu0 %v1400_v2, %s1285_s12  ;;  %382 = vrot.lane.b32.xlu1 %v1400_v2, %s1286_s13  ;;  %v1018_v19 = vcombine.low %v314_v5, %v314_v5  ;;  %s1296_s12 = smov 8  }
  0x21   : > { %436 = vrot.lane.b32.xlu1 %v1400_v2, %s1287_s14 }
  0x8f   : > { %v319_v3 = vpop.permute.xlu0 %318  ;;  %v383_v12 = vpop.permute.xlu1 %382 }
  0x90   : > { %v325_v4 = vsel %vm320_vm1, %v319_v3, 0  ;;  %v389_v13 = vsel %vm387_vm3, %v383_v12, 0 }
  0x91   : > { %1057 = vmatpush3.bf16.xpose.msra.mxu0 %v325_v4  ;;  %1063 = vmatpush3.bf16.msra.mxu1 %v389_v13 }
  0x92   : > { %1074 = vmatprep.subr.bf16.mxu0 %v1283_v0  ;;  %1068 = vmatprep.subr.bf16.mxu1 %v1283_v0 }
  0x93   : > { %v437_v20 = vpop.permute.xlu1 %436 }
  0x94   : > { %v442_v26 = vsel %vm320_vm1, %v437_v20, 0 }
  0x98   : > { %1059 = vmatmul.mubr.msk.bf16.vlgmr.msra.gmra.mrb[0].mxu0 %vm320_vm1, %v314_v5 }
  0x99   : > { %1076 = vmatprep.mubr.msk.bf16.mxu0 %vm1284_vm0, %v1283_v0 }
 0x16b   : > { %v361_v6 = vpop.f32.mrb[0].mxu0 }
 0x16c   : > { %v367_v7 = vpack.c.bf16 %v361_v6, %v361_v6  ;;  %v1060_v8 = vpop.f32.mrb[1].mxu0  ;;  %v370_v9 = vsel %vm320_vm1, %v361_v6, -inf }
 0x16d   : > { %371 = vmax.xlane.f32.xlu0 %v370_v9  ;;  %v364_v10 = vpop.f32.mrb[2].mxu0 }
 0x16e   : > { %369 = vst.msk [vmem:[%s1415_s17] sm:$0xf] %vm368_vm2, %v367_v7  ;;  %v1061_v11 = vpop.f32.mrb[3].mxu0 }
 0x183   : > { %662 = vrot.lane.b32.xlu0 %v1400_v2, %s1288_s24 }
 0x1fa   : > { %v372_v14 = vpop.xlane.xlu0 %371 }
 0x1fb   : > { %v373_v15 = vsub.f32 %v361_v6, %v372_v14 }
 0x1fd   : > { %v374_v16 = vmul.f32 1.442695, %v373_v15 }
 0x1fe   : > { %v663_v29 = vpop.permute.xlu0 %662 }
 0x1ff   : > { %1187 = vpow2.f32 %v374_v16  ;;  %v668_v31 = vsel %vm320_vm1, %v663_v29, 0  ;;  %v1185_v29 = vld [vmem:[%s1558_s1] sm:$0xff]  }
 0x209   : > { %v1188_v17 = vpop.eup %1187 }
 0x20a   : > { %v376_v18 = vsel %vm320_vm1, %v1188_v17, 0.0 }
 0x20b   : > { %377 = vadd.xlane.f32.xlu1 %v376_v18 }
 0x21c   : > { %434 = vrot.lane.b32.xlu1 %v1018_v19, %s1289_s25  ;;  %s1036_s25 = sshll.u32 %s1273_s21, 8  ;;  %s1299_s21 = smov [#allocation2]  }
 0x220   : > { %549 = vrot.lane.b32.xlu1 %v1400_v2, %s1290_s27  ;;  %s1012_s27 = sshll.u32 %s1391_s7, 3  ;;  %s1298_s7 = smov 24  }
 0x221   : > { %s1488_s24 = scalar_lea.vmem %s1561_s4, %s1012_s27 }
 0x224   : > { %547 = vrot.lane.b32.xlu1 %v1018_v19, %s1291_s29 }
 0x228   : > { %660 = vrot.lane.b32.xlu1 %v1018_v19, %s1292_s8 }
 0x298   : > { %v378_v21 = vpop.xlane.xlu1 %377 }
 0x299   : > { %1189 = vrcp.f32 %v378_v21 }
 0x29c   : > { %v435_v24 = vpop.permute.xlu1 %434 }
 0x2a0   : > { %v550_v27 = vpop.permute.xlu1 %549 }
 0x2a1   : > { %v555_v28 = vsel %vm320_vm1, %v550_v27, 0 }
 0x2a3   : > { %v1190_v22 = vpop.eup %1189 }
 0x2a4   : > { %v380_v23 = vmul.f32 %v1190_v22, %v1188_v17  ;;  %v548_v30 = vpop.permute.xlu1 %547 }
 0x2a6   : > { %v381_v25 = vpack.c.bf16 %v380_v23, %v380_v23 }
 0x2a8   : > { %1065 = vmatmul.mubr.msk.bf16.vlgmr.msra.gmra.mrb[0].mxu1 %vm320_vm1, %v381_v25  ;;  %v661_v32 = vpop.permute.xlu1 %660 }
 0x2a9   : > { %1069 = vmatpush3.bf16.xpose.msra.mxu1 %v442_v26  ;;  %1070 = vmatprep.mubr.msk.bf16.mxu1 %vm1284_vm0, %v1283_v0 }
 0x2aa   : > { %1080 = vmatprep.subr.bf16.mxu1 %v1283_v0 }
 0x2b0   : > { %1071 = vmatmul.mubr.msk.bf16.vlgmr.msra.gmra.mrb[4].mxu1 %vm320_vm1, %v435_v24 }
 0x2b1   : > { %1081 = vmatpush3.bf16.xpose.msra.mxu1 %v555_v28  ;;  %1082 = vmatprep.mubr.msk.bf16.mxu1 %vm1284_vm0, %v1283_v0 }
 0x2b2   : > { %1092 = vmatprep.subr.bf16.mxu1 %v1283_v0 }
 0x2b8   : > { %1083 = vmatmul.mubr.msk.bf16.vlgmr.msra.gmra.mrb[8].mxu1 %vm320_vm1, %v548_v30  ;;  %v1186_v30 = vld [vmem:[%s1558_s1 + $0x8] sm:$0xff]  }
 0x2b9   : > { %1093 = vmatpush3.bf16.xpose.msra.mxu1 %v668_v31  ;;  %1094 = vmatprep.mubr.msk.bf16.mxu1 %vm1284_vm0, %v1283_v0  ;;  %v1014_v31 = vld [vmem:[%s1559_s2] ss:$0 sm:$0xff] }
 0x2ba   : > { %1104 = vmatprep.subr.bf16.mxu1 %v1283_v0 }
 0x2c0   : > { %1095 = vmatmul.mubr.msk.bf16.vlgmr.msra.gmra.mrb[12].mxu1 %vm320_vm1, %v661_v32 }
 0x2c1   : > { %1108 = vmatprep.mubr.msk.bf16.mxu1 %vm1284_vm0, %v1283_v0  ;;  %1105 = vmatpush3.bf16.msra.mxu1 %v1185_v29 }
 0x2c2   : > { %1106 = vmatprep.subr.bf16.mxu1 %v1283_v0 }
 0x2c5   : > { %1107 = vmatpush3.bf16.msra.mxu1 %v1186_v30 }
 0x37b   : > { %v1442_v33 = vpop.f32.mrb[0].mxu1 }
 0x37c   : > { %v1066_v34 = vpop.f32.mrb[1].mxu1 }
 0x37d   : > { %v428_v35 = vpop.f32.mrb[2].mxu1 }
 0x37e   : > { %v1067_v36 = vpop.f32.mrb[3].mxu1 }
 0x383   : > { %v478_v37 = vpop.f32.mrb[4].mxu1 }
 0x384   : > { %v484_v38 = vpack.c.bf16 %v478_v37, %v478_v37  ;;  %v1072_v39 = vpop.f32.mrb[5].mxu1  ;;  %v487_v40 = vsel %vm320_vm1, %v478_v37, -inf }
 0x385   : > { %488 = vmax.xlane.f32.xlu1 %v487_v40  ;;  %v481_v41 = vpop.f32.mrb[6].mxu1 }
 0x386   : > { %1020 = vst.msk [vmem:[%s1415_s17 + $0x4] sm:$0xf] %vm368_vm2, %v484_v38  ;;  %v1073_v42 = vpop.f32.mrb[7].mxu1 }
 0x38b   : > { %v591_v43 = vpop.f32.mrb[8].mxu1 }
 0x38c   : > { %v597_v44 = vpack.c.bf16 %v591_v43, %v591_v43  ;;  %v600_v45 = vsel %vm320_vm1, %v591_v43, -inf  ;;  %v1084_v46 = vpop.f32.mrb[9].mxu1 }
 0x38d   : > { %601 = vmax.xlane.f32.xlu0 %v600_v45  ;;  %v594_v47 = vpop.f32.mrb[10].mxu1 }
 0x38e   : > { %1023 = vst.msk [vmem:[%s1415_s17 + $0x8] sm:$0xf] %vm368_vm2, %v597_v44  ;;  %v1085_v48 = vpop.f32.mrb[11].mxu1 }
 0x393   : > { %v704_v49 = vpop.f32.mrb[12].mxu1 }
 0x394   : > { %v710_v50 = vpack.c.bf16 %v704_v49, %v704_v49  ;;  %v713_v51 = vsel %vm320_vm1, %v704_v49, -inf  ;;  %v1096_v52 = vpop.f32.mrb[13].mxu1 }
 0x395   : > { %714 = vmax.xlane.f32.xlu1 %v713_v51  ;;  %v707_v53 = vpop.f32.mrb[14].mxu1 }
 0x396   : > { %1026 = vst.msk [vmem:[%s1415_s17 + $0xc] sm:$0xf] %vm368_vm2, %v710_v50  ;;  %v1097_v54 = vpop.f32.mrb[15].mxu1 }
 0x412   : > { %v489_v55 = vpop.xlane.xlu1 %488 }
 0x413   : > { %v490_v56 = vsub.f32 %v478_v37, %v489_v55 }
 0x415   : > { %v491_v57 = vmul.f32 1.442695, %v490_v56 }
 0x417   : > { %1191 = vpow2.f32 %v491_v57 }
 0x41a   : > { %v602_v3 = vpop.xlane.xlu0 %601 }
 0x41b   : > { %v603_v4 = vsub.f32 %v591_v43, %v602_v3 }
 0x41d   : > { %v604_v5 = vmul.f32 1.442695, %v603_v4 }
 0x421   : > { %v1192_v58 = vpop.eup %1191 }
 0x422   : > { %v715_v59 = vpop.xlane.xlu1 %714  ;;  %v493_v60 = vsel %vm320_vm1, %v1192_v58, 0.0 }
 0x423   : > { %v716_v61 = vsub.f32 %v704_v49, %v715_v59  ;;  %494 = vadd.xlane.f32.xlu1 %v493_v60 }
 0x425   : > { %v717_v62 = vmul.f32 1.442695, %v716_v61 }
 0x427   : > { %1193 = vpow2.f32 %v717_v62 }
 0x428   : > { %1195 = vpow2.f32 %v604_v5 }
 0x431   : > { %v1194_v63 = vpop.eup %1193 }
 0x432   : > { %v719_v1 = vsel %vm320_vm1, %v1194_v63, 0.0  ;;  %v1196_v6 = vpop.eup %1195 }
 0x433   : > { %720 = vadd.xlane.f32.xlu0 %v719_v1  ;;  %v606_v7 = vsel %vm320_vm1, %v1196_v6, 0.0 }
 0x434   : > { %499 = vrot.lane.b32.xlu1 %v1400_v2, %s1293_s9  ;;  %s1500_s9 = scalar_lea.hbm %s1562_s5, %s1036_s25 }
 0x449   : > { %612 = vrot.lane.b32.xlu0 %v1400_v2, %s1294_s10  ;;  %s1506_s10 = scalar_lea.sflag [#allocation3], %s271_s15 }
 0x458   : > { %607 = vadd.xlane.f32.xlu1 %v606_v7 }
 0x469   : > { %725 = vrot.lane.b32.xlu1 %v1400_v2, %s1295_s11  ;;  %s290_s11 = scalar_lea.vmem %s1560_s3, %s1012_s27  ;;  %s877_s27 = sshll.u32 %s1415_s17, 4  ;;  %s1502_s27 = int_to_ptr.vmem [resolvable:$true] %s877_s27 }
 0x46a   : > { %s1207_s17 = sshll.u32 %s1299_s21, 4  ;;  %s1208_s17 = int_to_ptr.vmem [resolvable:$false] %s1207_s17 }
 0x46b   : > { %p1210_p1 = scmp.lt.s32.totalorder %s1502_s27, %s1208_s17 }
 0x4b0   : > { %v495_v8 = vpop.xlane.xlu1 %494 }
 0x4b1   : > { %1197 = vrcp.f32 %v495_v8 }
 0x4b4   : > { %v500_v9 = vpop.permute.xlu1 %499 }
 0x4b5   : > { %v505_v10 = vsel %vm387_vm3, %v500_v9, 0 }
 0x4b6   : > { %1075 = vmatpush3.bf16.msra.mxu0 %v505_v10 }
 0x4b7   : > { %1086 = vmatprep.subr.bf16.mxu0 %v1283_v0 }
 0x4bb   : > { %v1198_v11 = vpop.eup %1197 }
 0x4bc   : > { %v497_v12 = vmul.f32 %v1198_v11, %v1192_v58 }
 0x4be   : > { %v498_v13 = vpack.c.bf16 %v497_v12, %v497_v12 }
 0x4c0   : > { %1077 = vmatmul.mubr.msk.bf16.vlgmr.msra.gmra.mrb[4].mxu0 %vm320_vm1, %v498_v13  ;;  %v721_v14 = vpop.xlane.xlu0 %720 }
 0x4c1   : > { %1088 = vmatprep.mubr.msk.bf16.mxu0 %vm1284_vm0, %v1283_v0 }
 0x4c4   : > { %v613_v15 = vpop.permute.xlu0 %612 }
 0x4c5   : > { %v618_v2 = vsel %vm387_vm3, %v613_v15, 0 }
 0x4c6   : > { %1087 = vmatpush3.bf16.msra.mxu0 %v618_v2 }
 0x4c7   : > { %1098 = vmatprep.subr.bf16.mxu0 %v1283_v0 }
 0x4e5   : > { %v608_v16 = vpop.xlane.xlu1 %607 }
 0x4e6   : > { %1199 = vrcp.f32 %v608_v16 }
 0x4e7   : > { %1201 = vrcp.f32 %v721_v14 }
 0x4e9   : > { %v726_v18 = vpop.permute.xlu1 %725 }
 0x4ea   : > { %v731_v20 = vsel %vm387_vm3, %v726_v18, 0 }
 0x4f0   : > { %v1200_v17 = vpop.eup %1199 }
 0x4f1   : > { %v610_v19 = vmul.f32 %v1200_v17, %v1196_v6  ;;  %v1202_v22 = vpop.eup %1201 }
 0x4f2   : > { %v723_v23 = vmul.f32 %v1202_v22, %v1194_v63 }
 0x4f3   : > { %v611_v21 = vpack.c.bf16 %v610_v19, %v610_v19 }
 0x4f4   : > { %v724_v24 = vpack.c.bf16 %v723_v23, %v723_v23 }
 0x4f5   : > { %1089 = vmatmul.mubr.msk.bf16.vlgmr.msra.gmra.mrb[8].mxu0 %vm320_vm1, %v611_v21 }
 0x4f6   : > { %1099 = vmatpush3.bf16.msra.mxu0 %v731_v20  ;;  %1100 = vmatprep.mubr.msk.bf16.mxu0 %vm1284_vm0, %v1283_v0  ;;  %v302_v0 = vld [vmem:[%s290_s11] sm:$0xff]  ;;  %s1203_s11 = scalar_lea.vmem %s1502_s27, 256 }
 0x4f7   : > { %v310_v36 = vadd.f32 %v1014_v31, %v302_v0  ;;  %p1204_p12 = scmp.ne.s32.totalorder %s1502_s27, %s1203_s11 }
 0x4f9   : > { %312 = vst.msk [vmem:[%s1488_s24] sm:$0xff] %vm311_vm4, %v310_v36  ;;  %p1205_p13 = pnand %p1204_p12, %p1371_p4 }
 0x4fb   : > { %p1206_p0 = pneg %p1205_p13 }
 0x4fd   : > { %1101 = vmatmul.mubr.msk.bf16.vlgmr.msra.gmra.mrb[12].mxu0 %vm320_vm1, %v724_v24 }
 0x593   : > { %v541_v25 = vpop.f32.mrb[4].mxu0 }
 0x594   : > { %774 = vrot.lane.b32.xlu1 %v541_v25, %s1296_s12  ;;  %v1078_v26 = vpop.f32.mrb[5].mxu0  ;;  %s1297_s12 = smov 16  }
 0x595   : > { %v544_v27 = vpop.f32.mrb[6].mxu0 }
 0x596   : > { %v1079_v28 = vpop.f32.mrb[7].mxu0 }
 0x5c8   : > { %v654_v32 = vpop.f32.mrb[8].mxu0 }
 0x5c9   : > { %778 = vrot.lane.b32.xlu0 %v654_v32, %s1297_s12  ;;  %v1090_v34 = vpop.f32.mrb[9].mxu0  ;;  %s1209_s12 = scalar_lea.vmem %s1208_s17, 512 }
 0x5ca   : > { %v657_v35 = vpop.f32.mrb[10].mxu0  ;;  %p1211_p2 = scmp.lt.s32.totalorder %s1209_s12, %s1203_s11 }
 0x5cb   : > { %v1091_v37 = vpop.f32.mrb[11].mxu0 }
 0x5cc   : > { %p1212_p3 = por %p1211_p2, %p1210_p1 }
 0x5ce   : > { %p1213_p5 = pnand %p1212_p3, %p1206_p0 }
 0x5d0   : > { %v767_v38 = vpop.f32.mrb[12].mxu0 }
 0x5d1   : > { %782 = vrot.lane.b32.xlu1 %v767_v38, %s1298_s7  ;;  %v1102_v39 = vpop.f32.mrb[13].mxu0 }
 0x5d2   : > { %v770_v40 = vpop.f32.mrb[14].mxu0 }
 0x5d3   : > { %v1103_v41 = vpop.f32.mrb[15].mxu0 }
 0x606   : > { %v775_v42 = vpop.permute.xlu1 %774 }
 0x607   : > { %v785_v44 = vsel %vm320_vm1, %v1442_v33, %v775_v42 }
 0x63b   : > { %v779_v43 = vpop.permute.xlu0 %778 }
 0x63c   : > { %v787_v45 = vsel %vm786_vm5, %v785_v44, %v779_v43 }
 0x643   : > { %v783_v46 = vpop.permute.xlu1 %782 }
 0x644   : > { %v789_v47 = vsel %vm788_vm6, %v787_v45, %v783_v46 }
 0x645   : > { %v791_v48 = vpack.c.bf16 %v789_v47, %v789_v47 }
 0x647   : > { %1109 = vmatmul.mubr.msk.bf16.vlgmr.msra.gmra.mrb[16].mxu1 %vm311_vm4, %v791_v48 }
 0x648   : > { %1216 = shalt.err (!%p1213_p5)
}
 0x649   : > { %s1217_s15 = scalar_lea.hbm %s1500_s9, 256  ;;  %s1221_s7 = scalar_lea.hbm %s1562_s5, 512 }
 0x64a   : > { %p1218_p6 = scmp.ne.s32.totalorder %s1500_s9, %s1217_s15  ;;  %p1222_p10 = scmp.lt.u32.totalorder %s1500_s9, %s1562_s5 }
 0x64b   : > { %p1223_p11 = scmp.lt.u32.totalorder %s1221_s7, %s1217_s15  ;;  %p1225_p13 = scmp.lt.u32.totalorder %s1217_s15, %s1500_s9 }
 0x64c   : > { %p1219_p7 = pnand %p1218_p6, %p1371_p4 }
 0x64d   : > { %p1224_p12 = por %p1223_p11, %p1222_p10 }
 0x64e   : > { %p1220_p9 = pneg %p1219_p7 }
 0x64f   : > { %p1226_p0 = por %p1225_p13, %p1224_p12 }
 0x651   : > { %p1227_p1 = pnand %p1226_p0, %p1220_p9 }
 0x653   : > { %1230 = shalt.err (!%p1227_p1)
}
 0x654   : > { %s1300_s8 = smov 4   ;;  %v790_v33 = vld [vmem:[%s1488_s24] sm:$0xff] }
 0x655   : > { %1112 = dma.vmem_to_hbm [thread:$0]  (%p1371_p4), %s1502_s27, 256, %s1500_s9, %s1506_s10, %s1286_s13, %s1286_s13, %s1300_s8  }
 0x71a   : > { %v846_v49 = vpop.f32.mrb[16].mxu1 }
 0x71b   : > { %v852_v50 = vadd.f32 %v846_v49, %v790_v33  ;;  %v1110_v51 = vpop.f32.mrb[17].mxu1 }
 0x71c   : > { %v849_v52 = vpop.f32.mrb[18].mxu1 }
 0x71d   : > { %853 = vst.msk [vmem:[%s1488_s24] sm:$0xff] %vm311_vm4, %v852_v50  ;;  %v1111_v53 = vpop.f32.mrb[19].mxu1 }
 0x71e PF: > { %p1118_p2 = scmp.ge.s32.totalorder %s1281_s23, 2  ;;  %s899_s28 = sand.u32 1, %s1261_s18  }
 0x71f   : > { %s900_s11 = scalar_lea.sflag [#allocation3], %s899_s28 }
 0x720   : > { %p1115_p3 = pnand %p1118_p2, %p1378_p8 }
 0x722   : > { %1256 = dma.done.wait (!%p1115_p3), %s900_s11, 256  }
 0x723   : > { %1258 = vsyncadd (!%p1115_p3), %s900_s11, 4294967040  ;;  %s19_s23 = sadd.s32 1, %s1281_s23   ;;  %s1565_s18 = smov %s1265_s19 }
 0x724   : > { %p16_p4 = scmp.ge.s32.totalorder %s19_s23, 4   ;;  %s1566_s19 = smov %s1269_s20 }
 0x725   : > { %s1567_s20 = smov %s1384_s6  ;;  %s1568_s21 = smov %s1277_s22 }
 0x726   : > { %s1569_s22 = smov %s1571_s26  ;;  %18 = sbr.rel (!%p16_p4) target bundleno = 4 (0x4), region = 96 }
 0x72d   :  { %905 = vsyncpa [#allocation3], 1 }
 0x72e   :  { %907 = vsyncpa [#allocation3 + $0x1], 1 }

// kernel: encoder_layer_forward.7
= control target key start
LH: loop header
LB: loop body
LE: loop exit
PB: predicated region body
PF: predicated region fallthrough
CT: control target
= control target key end

     0   :  { %v191_v1 = vmov 0.0   ;;  %vm192_vm0 = vmmov 0   ;;  %s257_s0 = inlined_call_operand.vmem [shape: bf16[16,64], index: 0, kind: input, shape index: {}]   ;;  %s258_s1 = inlined_call_operand.vmem [shape: bf16[64,32], index: 1, kind: input, shape index: {}]   ;;  %s259_s2 = inlined_call_operand.vmem [shape: f32[1,32], index: 2, kind: input, shape index: {}]   ;;  %s260_s3 = inlined_call_operand.vmem [shape: f32[16,32], index: 3, kind: input, shape index: {}]   ;;  %s261_s4 = inlined_call_operand.hbm [shape: f32[16,32], index: 4, kind: output, shape index: {}]  }
   0x1   :  { %v162_v0 = vld [vmem:[%s258_s1] sm:$0xff]   ;;  %145 = vmatprep.subr.bf16.mxu0 %v191_v1  ;;  %v163_v2 = vld [vmem:[%s258_s1 + $0x8] sm:$0xff]   ;;  %153 = vmatprep.mubr.msk.bf16.mxu0 %vm192_vm0, %v191_v1 }
   0x2   :  { %146 = vmatpush3.bf16.msra.mxu0 %v162_v0 }
   0x3   :  { %147 = vmatprep.subr.bf16.mxu0 %v191_v1 }
   0x4   :  { %9 = vsyncpa [#allocation3], 0  ;;  %v164_v3 = vld [vmem:[%s258_s1 + $0x10] sm:$0xff]   ;;  %v165_v4 = vld [vmem:[%s258_s1 + $0x18] sm:$0xff]   ;;  %vm65_vm1 = vcmask 523264   ;;  %s193_s1 = smov [#allocation2]  }
   0x5   :  { %v166_v5 = vld [vmem:[%s257_s0] sm:$0xff]   ;;  %s122_s29 = sshll.u32 %s193_s1, 4  ;;  %vm114_vm2 = vcmask 261120   ;;  %v111_v12 = vld [vmem:[%s260_s3 + $0x8] sm:$0xff]  ;;  %s123_s29 = int_to_ptr.vmem [resolvable:$true] %s122_s29 }
   0x6   :  { %148 = vmatpush3.bf16.msra.mxu0 %v163_v2  ;;  %v133_v6 = vld [vmem:[%s259_s2] ss:$0 sm:$0xff]  ;;  %s167_s2 = scalar_lea.vmem %s123_s29, 256  ;;  %p172_p1 = scmp.lt.s32.totalorder %s123_s29, %s123_s29 }
   0x7   :  { %149 = vmatprep.subr.bf16.mxu0 %v191_v1  ;;  %v110_v8 = vld [vmem:[%s260_s3] sm:$0xff]  ;;  %p168_p0 = scmp.ne.s32.totalorder %s123_s29, %s167_s2  ;;  %p173_p2 = scmp.lt.s32.totalorder %s167_s2, %s167_s2 }
   0x9   :  { %p174_p3 = por %p173_p2, %p172_p1 }
   0xa   :  { %150 = vmatpush3.bf16.msra.mxu0 %v164_v3 }
   0xb   :  { %151 = vmatprep.subr.bf16.mxu0 %v191_v1  ;;  %p175_p4 = pnand %p174_p3, %p168_p0 }
   0xe   :  { %152 = vmatpush3.bf16.msra.mxu0 %v165_v4 }
  0x11   :  { %154 = vmatmul.mubr.msk.bf16.vlgmr.msra.gmra.mrb[0].mxu0 %vm65_vm1, %v166_v5 }
  0xe4   :  { %v103_v7 = vpop.f32.mrb[0].mxu0 }
  0xe5   :  { %v104_v9 = vadd.f32 %v133_v6, %v103_v7  ;;  %v155_v10 = vpop.f32.mrb[1].mxu0 }
  0xe6   :  { %v106_v11 = vpop.f32.mrb[2].mxu0 }
  0xe7   :  { %v112_v13 = vadd.f32 %v110_v8, %v104_v9  ;;  %v107_v14 = vadd.f32 %v133_v6, %v106_v11  ;;  %v156_v15 = vpop.f32.mrb[3].mxu0 }
  0xe9   :  { %115 = vst.msk [vmem:[#allocation2] sm:$0xff] %vm114_vm2, %v112_v13  ;;  %v113_v16 = vadd.f32 %v111_v12, %v107_v14 }
  0xeb   :  { %116 = vst.msk [vmem:[#allocation2 + $0x8] sm:$0xff] %vm114_vm2, %v113_v16 }
  0xec   :  { %178 = shalt.err (!%p175_p4)
}
  0xed   :  { %s179_s7 = scalar_lea.hbm %s261_s4, 256 }
  0xee   :  { %p180_p5 = scmp.ne.s32.totalorder %s261_s4, %s179_s7  ;;  %p183_p6 = scmp.lt.u32.totalorder %s179_s7, %s261_s4 }
  0xf0   :  { %p185_p7 = pnand %p183_p6, %p180_p5 }
  0xf2   :  { %188 = shalt.err (!%p185_p7)
}
  0xf3   :  { %s194_s11 = smov 128   ;;  %s195_s12 = smov 8  }
  0xf4   :  { %128 = dma.vmem_to_hbm [thread:$0]  %s123_s29, 256, %s261_s4, [#allocation3], %s194_s11, %s194_s11, %s195_s12  }
  0xf5   :  { %189 = dma.done.wait [#allocation3], 256  }
  0xf6   :  { %190 = vsyncadd [#allocation3], 4294967040 }
  0xf7   :  { %132 = vsyncpa [#allocation3], 1 }

</bundles_post_ra>
